<compile_context>
chip_gen: v5e
topology: v5e:2x2
jax: 0.10.0
libtpu: 0.0.40
codegen_flags: <defaults>
</compile_context>

<pallas_src>
import functools

import jax
import jax.numpy as jnp
from jax import lax
from jax.experimental import pallas as pl
from jax.experimental.pallas import tpu as pltpu

NUM_CLASSES = 10
IN_FEATURES = 784
MIN_VAL = -10.0   # clamp_min (Model.__init__ default min_value=-10)
MAX_VAL = 10.5    # clamp_max
MAX_TB = 1024     # cap on the batch tile (rows)


def _round_up(n, m):
    return ((n + m - 1) // m) * m


def _linear_clamp_argmax_kernel(x_ref, wt_ref, b_ref, o_ref):
    # x_ref:  (TB, 784) f32/bf16     wt_ref: (784, 10) f32/bf16
    # b_ref:  (1, 10)  f32           o_ref:  (TB, 1)   int32
    logits = jnp.dot(x_ref[...], wt_ref[...],
                     preferred_element_type=jnp.float32)       # (TB, 10) f32
    v = logits + b_ref[...]                                    # bias broadcast
    v = jnp.minimum(jnp.maximum(v, MIN_VAL), MAX_VAL)          # clamp_min/max
    # argmax over the class (lane) axis, first-occurrence semantics.
    col = lax.broadcasted_iota(jnp.int32, v.shape, dimension=1)
    mx = jnp.max(v, axis=1, keepdims=True)                     # (TB, 1)
    idx = jnp.where(v == mx, col, NUM_CLASSES)
    o_ref[...] = jnp.min(idx, axis=1, keepdims=True).astype(jnp.int32)


@functools.partial(jax.jit, static_argnames=("use_bf16",))
def linear_clamp_argmax(x, w, b, *, use_bf16=False):
    """x: (B, 28, 28) f32; w: (10, 784) f32 (PyTorch layout); b: (10,) f32.
    Returns (B,) int32 = argmax(clamp(x.reshape(B,784) @ w.T + b, -10, 10.5), 1)."""
    B = x.shape[0]
    x2d = jnp.reshape(x, (B, IN_FEATURES))      # layout-compatible, free in XLA
    w_t = jnp.transpose(w)                      # (784, 10): tiny one-time transpose
    b2d = jnp.reshape(b, (1, NUM_CLASSES))

    if use_bf16:                                # halves HBM traffic on x; f32 accum
        x2d = x2d.astype(jnp.bfloat16)
        w_t = w_t.astype(jnp.bfloat16)
    in_bytes = jnp.dtype(x2d.dtype).itemsize

    # Batch tile: one block for small/moderate B; for large B make >= 2 grid
    # steps (v7x has 2 TensorCores on the "parallel" axis), 128-aligned rows.
    if B <= 512:
        TB = B
    else:
        TB = min(MAX_TB, _round_up(pl.cdiv(B, 2), 128))
    grid = (pl.cdiv(B, TB),)

    out = pl.pallas_call(
        _linear_clamp_argmax_kernel,
        out_shape=jax.ShapeDtypeStruct((B, 1), jnp.int32),
        grid=grid,
        in_specs=[
            pl.BlockSpec((TB, IN_FEATURES), lambda i: (i, 0)),
            pl.BlockSpec((IN_FEATURES, NUM_CLASSES), lambda i: (0, 0)),
            pl.BlockSpec((1, NUM_CLASSES), lambda i: (0, 0)),
        ],
        out_specs=pl.BlockSpec((TB, 1), lambda i: (i, 0)),
        compiler_params=pltpu.CompilerParams(
            dimension_semantics=("parallel",),
            vmem_limit_bytes=32 * 1024 * 1024),
        cost_estimate=pl.CostEstimate(
            flops=2 * B * IN_FEATURES * NUM_CLASSES,
            transcendentals=0,
            bytes_accessed=(B * IN_FEATURES * in_bytes
                            + NUM_CLASSES * IN_FEATURES * in_bytes
                            + NUM_CLASSES * 4
                            + B * 4)),
    )(x2d, w_t, b2d)
    # TODO(synk): torch.argmax returns int64; int32 kept here (TPU-friendly).
    return out[:, 0]


if __name__ == "__main__":
    key = jax.random.PRNGKey(0)
    kx, kw, kb = jax.random.split(key, 3)

    B = 128                                   # matches the PyTorch spec input
    x1 = jax.random.normal(kx, (B, 28, 28), dtype=jnp.float32)

    # torch.nn.Linear(784, 10): weight (10, 784), bias (10,), U(+-1/sqrt(784))
    bound = 1.0 / jnp.sqrt(784.0)
    w = jax.random.uniform(kw, (NUM_CLASSES, IN_FEATURES), jnp.float32,
                           minval=-bound, maxval=bound)
    b = jax.random.uniform(kb, (NUM_CLASSES,), jnp.float32,
                           minval=-bound, maxval=bound)

    out = jax.block_until_ready(linear_clamp_argmax(x1, w, b))

    # Pure-JAX reference (high-precision matmul); tolerate argmax flips only on
    # genuine numerical near-ties between the MXU multi-pass f32 path and XLA.
    x2d = jnp.reshape(x1, (B, IN_FEATURES))
    ref_logits = jnp.einsum("bf,cf->bc", x2d, w,
                            precision=jax.lax.Precision.HIGHEST) + b
    ref_v = jnp.clip(ref_logits, MIN_VAL, MAX_VAL)
    ref_idx = jnp.argmax(ref_v, axis=1).astype(jnp.int32)
    picked = jnp.take_along_axis(ref_v, out[:, None], axis=1)[:, 0]
    gap = jnp.max(ref_v, axis=1) - picked
    ok = (out == ref_idx) | (gap <= 1e-3)

    assert out.shape == (B,)
    assert out.dtype == jnp.int32
    assert bool(jnp.all(ok))
    print("KERNEL_OK")
</pallas_src>

<mosaic_0001>
module attributes {stable_mosaic.version = 11 : i64} {
  func.func @_linear_clamp_argmax_kernel(%arg0: i32, %arg1: memref<128x784xf32, #tpu.memory_space<vmem>>, %arg2: memref<784x10xf32, #tpu.memory_space<vmem>>, %arg3: memref<1x10xf32, #tpu.memory_space<vmem>>, %arg4: memref<128x1xi32, #tpu.memory_space<vmem>>) attributes {dimension_semantics = [#tpu.dimension_semantics<parallel>], iteration_bounds = array<i64: 1>, scalar_prefetch = 0 : i64, scratch_operands = 0 : i64, tpu.core_type = #tpu.core_type<tc>, window_params = [{transform_indices = @transform_0, window_bounds = array<i64: 128, 784>}, {pipeline_mode = #tpu.pipeline_mode<synchronous>, transform_indices = @transform_1, window_bounds = array<i64: 784, 10>}, {pipeline_mode = #tpu.pipeline_mode<synchronous>, transform_indices = @transform_2, window_bounds = array<i64: 1, 10>}, {transform_indices = @transform_3, window_bounds = array<i64: 128, 1>}]} {
    %c0 = arith.constant 0 : index
    %c0_0 = arith.constant 0 : index
    %0 = vector.load %arg1[%c0, %c0_0] : memref<128x784xf32, #tpu.memory_space<vmem>>, vector<128x784xf32>
    %c0_1 = arith.constant 0 : index
    %c0_2 = arith.constant 0 : index
    %1 = vector.load %arg2[%c0_1, %c0_2] : memref<784x10xf32, #tpu.memory_space<vmem>>, vector<784x10xf32>
    %cst = arith.constant dense<0.000000e+00> : vector<128x10xf32>
    %2 = tpu.matmul %0, %1, %cst {dimension_numbers = #tpu.dot_dimension_numbers<[1], [0], [0], [1], [0, 0, 1, 1], [], []>} : vector<128x784xf32>, vector<784x10xf32>, vector<128x10xf32> -> vector<128x10xf32>
    %c0_3 = arith.constant 0 : index
    %c0_4 = arith.constant 0 : index
    %3 = vector.load %arg3[%c0_3, %c0_4] : memref<1x10xf32, #tpu.memory_space<vmem>>, vector<1x10xf32>
    %4 = vector.broadcast %3 : vector<1x10xf32> to vector<128x10xf32>
    %5 = arith.addf %2, %4 : vector<128x10xf32>
    %cst_5 = arith.constant -1.000000e+01 : f32
    %6 = vector.broadcast %cst_5 : f32 to vector<128x10xf32>
    %7 = arith.maximumf %5, %6 : vector<128x10xf32>
    %cst_6 = arith.constant 1.050000e+01 : f32
    %8 = vector.broadcast %cst_6 : f32 to vector<128x10xf32>
    %9 = arith.minimumf %7, %8 : vector<128x10xf32>
    %10 = tpu.iota {dimensions = array<i32: 1>} : vector<128x10xi32>
    %cst_7 = arith.constant dense<0xFF800000> : vector<128xf32>
    %11 = vector.multi_reduction <maximumf>, %9, %cst_7 [1] : vector<128x10xf32> to vector<128xf32>
    %12 = vector.shape_cast %11 : vector<128xf32> to vector<128x1xf32>
    %13 = vector.broadcast %12 : vector<128x1xf32> to vector<128x10xf32>
    %14 = arith.cmpf oeq, %9, %13 : vector<128x10xf32>
    %c10_i32 = arith.constant 10 : i32
    %15 = vector.broadcast %c10_i32 : i32 to vector<128x10xi32>
    %16 = arith.select %14, %10, %15 : vector<128x10xi1>, vector<128x10xi32>
    %cst_8 = arith.constant dense<2147483647> : vector<128xi32>
    %17 = vector.multi_reduction <minsi>, %16, %cst_8 [1] : vector<128x10xi32> to vector<128xi32>
    %18 = vector.shape_cast %17 : vector<128xi32> to vector<128x1xi32>
    %c0_9 = arith.constant 0 : index
    %c0_10 = arith.constant 0 : index
    %19 = vector.load %arg4[%c0_9, %c0_10] : memref<128x1xi32, #tpu.memory_space<vmem>>, vector<128x1xi32>
    tpu.vector_store %arg4[%c0_9, %c0_10], %18 {strides = array<i32>} : memref<128x1xi32, #tpu.memory_space<vmem>>, vector<128x1xi32>,
    return
  }
  func.func @transform_0(%arg0: i32) -> (i32, i32) {
    %c0_i32 = arith.constant 0 : i32
    %c0_i32_0 = arith.constant 0 : i32
    return %arg0, %c0_i32 : i32, i32
  }
  func.func @transform_1(%arg0: i32) -> (i32, i32) {
    %c0_i32 = arith.constant 0 : i32
    %c0_i32_0 = arith.constant 0 : i32
    %c0_i32_1 = arith.constant 0 : i32
    return %c0_i32, %c0_i32_0 : i32, i32
  }
  func.func @transform_2(%arg0: i32) -> (i32, i32) {
    %c0_i32 = arith.constant 0 : i32
    %c0_i32_0 = arith.constant 0 : i32
    %c0_i32_1 = arith.constant 0 : i32
    return %c0_i32, %c0_i32_0 : i32, i32
  }
  func.func @transform_3(%arg0: i32) -> (i32, i32) {
    %c0_i32 = arith.constant 0 : i32
    %c0_i32_0 = arith.constant 0 : i32
    return %arg0, %c0_i32 : i32, i32
  }
}

</mosaic_0001>

<bundles_post_ra>
// kernel: linear_clamp_argmax.1
= control target key start
LH: loop header
LB: loop body
LE: loop exit
PB: predicated region body
PF: predicated region fallthrough
CT: control target
= control target key end

     0   :  { %vm228_vm0 = vcmask 130048   ;;  %vm766_vm1 = vcmask 80896   ;;  %s2427_s1 = inlined_call_operand.vmem [shape: f32[784,10], index: 1, kind: input, shape index: {}]   ;;  %s2428_s2 = inlined_call_operand.vmem [shape: f32[1,10], index: 2, kind: input, shape index: {}]   ;;  %s2429_s0 = inlined_call_operand.vmem [shape: f32[128,784], index: 0, kind: input, shape index: {}]   ;;  %s2430_s3 = inlined_call_operand.vmem [shape: s32[128,1], index: 3, kind: output, shape index: {}]  }
   0x1   :  { %v141_v0 = vld [vmem:[%s2427_s1 + $0x78] sm:$0xff]  ;;  %v140_v1 = vld [vmem:[%s2427_s1 + $0x70] sm:$0xff]  ;;  %v139_v4 = vld [vmem:[%s2427_s1 + $0x68] sm:$0xff] }
   0x2   :  { %277 = vmatpush.msra.mxu0 %v141_v0  ;;  %1124 = vmatpush.msra.mxu3 %v141_v0  ;;  %v1202_v2 = vld [vmem:[%s2427_s1 + $0x178] sm:$0xff]  ;;  %v1207_v3 = vld [vmem:[%s2427_s1 + $0x170] sm:$0xff]  ;;  %v1221_v6 = vld [vmem:[%s2427_s1 + $0x168] sm:$0xff] }
   0x3   :  { %1156 = vmatpush.msra.mxu2 %v1202_v2  ;;  %v1216_v5 = vld [vmem:[%s2427_s1 + $0xf8] sm:$0xff]  ;;  %v1226_v7 = vld [vmem:[%s2427_s1 + $0xf0] sm:$0xff]  ;;  %v138_v8 = vld [vmem:[%s2427_s1 + $0x60] sm:$0xff] }
   0x4   :  { %278 = vmatpush.msra.mxu0 %v140_v1  ;;  %1125 = vmatpush.msra.mxu3 %v140_v1  ;;  %v1236_v9 = vld [vmem:[%s2427_s1 + $0x160] sm:$0xff]  ;;  %v1241_v10 = vld [vmem:[%s2427_s1 + $0xe8] sm:$0xff]  ;;  %v137_v11 = vld [vmem:[%s2427_s1 + $0x58] sm:$0xff] }
   0x5   :  { %1157 = vmatpush.msra.mxu2 %v1207_v3  ;;  %1140 = vmatpush.msra.mxu1 %v1216_v5  ;;  %v1251_v12 = vld [vmem:[%s2427_s1 + $0x158] sm:$0xff]  ;;  %v1256_v13 = vld [vmem:[%s2427_s1 + $0xe0] sm:$0xff]  ;;  %v136_v14 = vld [vmem:[%s2427_s1 + $0x50] sm:$0xff] }
   0x6   :  { %279 = vmatpush.msra.mxu0 %v139_v4  ;;  %1126 = vmatpush.msra.mxu3 %v139_v4  ;;  %v1266_v15 = vld [vmem:[%s2427_s1 + $0x150] sm:$0xff]  ;;  %v1271_v16 = vld [vmem:[%s2427_s1 + $0xd8] sm:$0xff]  ;;  %v135_v17 = vld [vmem:[%s2427_s1 + $0x48] sm:$0xff] }
   0x7   :  { %1158 = vmatpush.msra.mxu2 %v1221_v6  ;;  %1141 = vmatpush.msra.mxu1 %v1226_v7  ;;  %v1281_v18 = vld [vmem:[%s2427_s1 + $0x148] sm:$0xff]  ;;  %v1286_v19 = vld [vmem:[%s2427_s1 + $0xd0] sm:$0xff]  ;;  %v134_v20 = vld [vmem:[%s2427_s1 + $0x40] sm:$0xff] }
   0x8   :  { %280 = vmatpush.msra.mxu0 %v138_v8  ;;  %1127 = vmatpush.msra.mxu3 %v138_v8  ;;  %v1296_v21 = vld [vmem:[%s2427_s1 + $0x140] sm:$0xff]  ;;  %v1301_v22 = vld [vmem:[%s2427_s1 + $0xc8] sm:$0xff]  ;;  %v133_v23 = vld [vmem:[%s2427_s1 + $0x38] sm:$0xff] }
   0x9   :  { %1159 = vmatpush.msra.mxu2 %v1236_v9  ;;  %1142 = vmatpush.msra.mxu1 %v1241_v10  ;;  %v1311_v24 = vld [vmem:[%s2427_s1 + $0x138] sm:$0xff]  ;;  %v1316_v25 = vld [vmem:[%s2427_s1 + $0xc0] sm:$0xff]  ;;  %v132_v26 = vld [vmem:[%s2427_s1 + $0x30] sm:$0xff] }
   0xa   :  { %281 = vmatpush.msra.mxu0 %v137_v11  ;;  %1128 = vmatpush.msra.mxu3 %v137_v11  ;;  %v1326_v27 = vld [vmem:[%s2427_s1 + $0x130] sm:$0xff]  ;;  %v1331_v28 = vld [vmem:[%s2427_s1 + $0xb8] sm:$0xff]  ;;  %v131_v29 = vld [vmem:[%s2427_s1 + $0x28] sm:$0xff] }
   0xb   :  { %1160 = vmatpush.msra.mxu2 %v1251_v12  ;;  %1143 = vmatpush.msra.mxu1 %v1256_v13  ;;  %v1341_v30 = vld [vmem:[%s2427_s1 + $0x128] sm:$0xff]  ;;  %v1346_v31 = vld [vmem:[%s2427_s1 + $0xb0] sm:$0xff]  ;;  %v130_v32 = vld [vmem:[%s2427_s1 + $0x20] sm:$0xff] }
   0xc   :  { %282 = vmatpush.msra.mxu0 %v136_v14  ;;  %1129 = vmatpush.msra.mxu3 %v136_v14  ;;  %v1356_v33 = vld [vmem:[%s2427_s1 + $0x120] sm:$0xff]  ;;  %v1361_v34 = vld [vmem:[%s2427_s1 + $0xa8] sm:$0xff]  ;;  %v129_v35 = vld [vmem:[%s2427_s1 + $0x18] sm:$0xff] }
   0xd   :  { %1161 = vmatpush.msra.mxu2 %v1266_v15  ;;  %1144 = vmatpush.msra.mxu1 %v1271_v16  ;;  %v1371_v36 = vld [vmem:[%s2427_s1 + $0x118] sm:$0xff]  ;;  %v1376_v37 = vld [vmem:[%s2427_s1 + $0xa0] sm:$0xff]  ;;  %v128_v38 = vld [vmem:[%s2427_s1 + $0x10] sm:$0xff] }
   0xe   :  { %283 = vmatpush.msra.mxu0 %v135_v17  ;;  %1130 = vmatpush.msra.mxu3 %v135_v17  ;;  %v1386_v39 = vld [vmem:[%s2427_s1 + $0x110] sm:$0xff]  ;;  %v1391_v40 = vld [vmem:[%s2427_s1 + $0x98] sm:$0xff]  ;;  %v127_v41 = vld [vmem:[%s2427_s1 + $0x8] sm:$0xff] }
   0xf   :  { %1162 = vmatpush.msra.mxu2 %v1281_v18  ;;  %1145 = vmatpush.msra.mxu1 %v1286_v19  ;;  %v1401_v42 = vld [vmem:[%s2427_s1 + $0x108] sm:$0xff]  ;;  %v1406_v43 = vld [vmem:[%s2427_s1 + $0x90] sm:$0xff]  ;;  %v126_v44 = vld [vmem:[%s2427_s1] sm:$0xff] }
  0x10   :  { %284 = vmatpush.msra.mxu0 %v134_v20  ;;  %1131 = vmatpush.msra.mxu3 %v134_v20  ;;  %v14_v45 = vld [vmem:[%s2429_s0] sm:$0xff]  ;;  %v189_v47 = vld [vmem:[%s2427_s1 + $0x1f8] sm:$0xff]  ;;  %v1432_v49 = vld [vmem:[%s2427_s1 + $0x88] sm:$0xff] }
  0x11   :  { %1163 = vmatpush.msra.mxu2 %v1296_v21  ;;  %1146 = vmatpush.msra.mxu1 %v1301_v22  ;;  %v42_v46 = vld [vmem:[%s2429_s0 + $0xe0] sm:$0xff]  ;;  %v44_v50 = vld [vmem:[%s2429_s0 + $0xf0] sm:$0xff]  ;;  %v223_v52 = vld [vmem:[%s2427_s1 + $0x308] sm:$0xff] }
  0x12   :  { %285 = vmatpush.msra.mxu0 %v133_v23  ;;  %1132 = vmatpush.msra.mxu3 %v133_v23  ;;  %v1427_v48 = vld [vmem:[%s2427_s1 + $0x100] sm:$0xff]  ;;  %v188_v51 = vld [vmem:[%s2427_s1 + $0x1f0] sm:$0xff]  ;;  %v43_v54 = vld [vmem:[%s2429_s0 + $0xe8] sm:$0xff] }
  0x13   :  { %1164 = vmatpush.msra.mxu2 %v1311_v24  ;;  %1147 = vmatpush.msra.mxu1 %v1316_v25  ;;  %v1449_v53 = vld [vmem:[%s2427_s1 + $0x80] sm:$0xff]  ;;  %v187_v55 = vld [vmem:[%s2427_s1 + $0x1e8] sm:$0xff]  ;;  %v221_v56 = vld [vmem:[%s2427_s1 + $0x2f8] sm:$0xff] }
  0x14   :  { %286 = vmatpush.msra.mxu0 %v132_v26  ;;  %1133 = vmatpush.msra.mxu3 %v132_v26  ;;  %v21_v57 = vld [vmem:[%s2429_s0 + $0x38] sm:$0xff]  ;;  %v220_v59 = vld [vmem:[%s2427_s1 + $0x2f0] sm:$0xff]  ;;  %v186_v60 = vld [vmem:[%s2427_s1 + $0x1e0] sm:$0xff] }
  0x15   :  { %1165 = vmatpush.msra.mxu2 %v1326_v27  ;;  %1148 = vmatpush.msra.mxu1 %v1331_v28  ;;  %v49_v58 = vld [vmem:[%s2429_s0 + $0x118] sm:$0xff]  ;;  %v51_v61 = vld [vmem:[%s2429_s0 + $0x128] sm:$0xff]  ;;  %v50_v0 = vld [vmem:[%s2429_s0 + $0x120] sm:$0xff] }
  0x16   :  { %287 = vmatpush.msra.mxu0 %v131_v29  ;;  %1134 = vmatpush.msra.mxu3 %v131_v29  ;;  %v219_v62 = vld [vmem:[%s2427_s1 + $0x2e8] sm:$0xff]  ;;  %v185_v63 = vld [vmem:[%s2427_s1 + $0x1d8] sm:$0xff]  ;;  %v184_v1 = vld [vmem:[%s2427_s1 + $0x1d0] sm:$0xff] }
  0x17   :  { %1166 = vmatpush.msra.mxu2 %v1341_v30  ;;  %1149 = vmatpush.msra.mxu1 %v1346_v31  ;;  %v218_v4 = vld [vmem:[%s2427_s1 + $0x2e0] sm:$0xff]  ;;  %v217_v8 = vld [vmem:[%s2427_s1 + $0x2d8] sm:$0xff]  ;;  %v35_v20 = vld [vmem:[%s2429_s0 + $0xa8] sm:$0xff] }
  0x18   :  { %288 = vmatpush.msra.mxu0 %v130_v32  ;;  %1135 = vmatpush.msra.mxu3 %v130_v32  ;;  %v58_v11 = vld [vmem:[%s2429_s0 + $0x160] sm:$0xff]  ;;  %v181_v17 = vld [vmem:[%s2427_s1 + $0x1b8] sm:$0xff]  ;;  %v179_v32 = vld [vmem:[%s2427_s1 + $0x1a8] sm:$0xff] }
  0x19   :  { %1167 = vmatpush.msra.mxu2 %v1356_v33  ;;  %1150 = vmatpush.msra.mxu1 %v1361_v34  ;;  %v182_v14 = vld [vmem:[%s2427_s1 + $0x1c0] sm:$0xff]  ;;  %v213_v29 = vld [vmem:[%s2427_s1 + $0x2b8] sm:$0xff] }
  0x1a   :  { %289 = vmatpush.msra.mxu0 %v129_v35  ;;  %1136 = vmatpush.msra.mxu3 %v129_v35  ;;  %v214_v23 = vld [vmem:[%s2427_s1 + $0x2c0] sm:$0xff]  ;;  %v15_v35 = vld [vmem:[%s2429_s0 + $0x8] sm:$0xff] }
  0x1b   :  { %1168 = vmatpush.msra.mxu2 %v1371_v36  ;;  %1151 = vmatpush.msra.mxu1 %v1376_v37  ;;  %v222_v26 = vld [vmem:[%s2427_s1 + $0x300] sm:$0xff] }
  0x1c   :  { %290 = vmatpush.msra.mxu0 %v128_v38  ;;  %1137 = vmatpush.msra.mxu3 %v128_v38  ;;  %v212_v38 = vld [vmem:[%s2427_s1 + $0x2b0] sm:$0xff] }
  0x1d   :  { %1169 = vmatpush.msra.mxu2 %v1386_v39  ;;  %1152 = vmatpush.msra.mxu1 %v1391_v40 }
  0x1e   :  { %291 = vmatpush.msra.mxu0 %v127_v41  ;;  %1138 = vmatpush.msra.mxu3 %v127_v41  ;;  %v71_v41 = vld [vmem:[%s2429_s0 + $0x1c8] sm:$0xff] }
  0x1f   :  { %1170 = vmatpush.msra.mxu2 %v1401_v42  ;;  %1153 = vmatpush.msra.mxu1 %v1406_v43 }
  0x20   :  { %292 = vmatpush.msra.mxu0 %v126_v44  ;;  %1139 = vmatpush.msra.mxu3 %v126_v44  ;;  %v79_v44 = vld [vmem:[%s2429_s0 + $0x208] sm:$0xff] }
  0x21   :  { %293 = vmatmul.f32.vlgmr.msra.gmra.mxu0 %v14_v45  ;;  %305 = vmatmul.f32.vlgmr.msra.gmra.mxu3 %v42_v46  ;;  %v210_v45 = vld [vmem:[%s2427_s1 + $0x2a0] sm:$0xff]  ;;  %v176_v46 = vld [vmem:[%s2427_s1 + $0x190] sm:$0xff] }
  0x22   :  { %472 = vmatpush.msrb.mxu3 %v189_v47  ;;  %342 = vmatpush.msrb.mxu0 %v1216_v5  ;;  %v28_v5 = vld [vmem:[%s2429_s0 + $0x70] sm:$0xff]  ;;  %v86_v47 = vld [vmem:[%s2429_s0 + $0x240] sm:$0xff] }
  0x23   :  { %1171 = vmatpush.msra.mxu2 %v1427_v48  ;;  %1154 = vmatpush.msra.mxu1 %v1432_v49 }
  0x24   :  { %343 = vmatpush.msrb.mxu0 %v1226_v7  ;;  %435 = vmatmul.f32.vlgmr.msra.gmra.mxu2 %v44_v50  ;;  %v56_v7 = vld [vmem:[%s2429_s0 + $0x150] sm:$0xff]  ;;  %v91_v50 = vld [vmem:[%s2429_s0 + $0x268] sm:$0xff] }
  0x25   :  { %473 = vmatpush.msrb.mxu3 %v188_v51  ;;  %681 = vmatpush.msrb.mxu2 %v223_v52  ;;  %v174_v51 = vld [vmem:[%s2427_s1 + $0x180] sm:$0xff]  ;;  %v207_v52 = vld [vmem:[%s2427_s1 + $0x288] sm:$0xff] }
  0x26   :  { %344 = vmatpush.msrb.mxu0 %v1241_v10  ;;  %1155 = vmatpush.msra.mxu1 %v1449_v53  ;;  %v183_v10 = vld [vmem:[%s2427_s1 + $0x1c8] sm:$0xff] }
  0x27   :  { %370 = vmatmul.f32.vlgmr.msra.gmra.mxu1 %v43_v54  ;;  %474 = vmatpush.msrb.mxu3 %v187_v55  ;;  %v204_v54 = vld [vmem:[%s2427_s1 + $0x270] sm:$0xff]  ;;  %v206_v55 = vld [vmem:[%s2427_s1 + $0x280] sm:$0xff] }
  0x28   :  { %345 = vmatpush.msrb.mxu0 %v1256_v13  ;;  %602 = vmatpush.msrb.mxu1 %v221_v56  ;;  %v216_v13 = vld [vmem:[%s2427_s1 + $0x2d0] sm:$0xff]  ;;  %v203_v56 = vld [vmem:[%s2427_s1 + $0x268] sm:$0xff] }
  0x29   :  { %296 = vmatmul.f32.gmra.mxu0 %v21_v57  ;;  %308 = vmatmul.f32.gmra.mxu3 %v49_v58  ;;  %v202_v57 = vld [vmem:[%s2427_s1 + $0x260] sm:$0xff]  ;;  %v105_v58 = vld [vmem:[%s2429_s0 + $0x2d8] sm:$0xff] }
  0x2a   :  { %346 = vmatpush.msrb.mxu0 %v1271_v16  ;;  %603 = vmatpush.msrb.mxu1 %v220_v59  ;;  %v57_v16 = vld [vmem:[%s2429_s0 + $0x158] sm:$0xff]  ;;  %v23_v59 = vld [vmem:[%s2429_s0 + $0x48] sm:$0xff] }
  0x2b   :  { %475 = vmatpush.msrb.mxu3 %v186_v60  ;;  %682 = vmatpush.msrb.mxu2 %v222_v26  ;;  %v201_v60 = vld [vmem:[%s2427_s1 + $0x258] sm:$0xff]  ;;  %v190_v26 = vld [vmem:[%s2427_s1 + $0x200] sm:$0xff] }
  0x2c   :  { %347 = vmatpush.msrb.mxu0 %v1286_v19  ;;  %438 = vmatmul.f32.gmra.mxu2 %v51_v61  ;;  %v215_v19 = vld [vmem:[%s2427_s1 + $0x2c8] sm:$0xff] }
  0x2d   :  { %604 = vmatpush.msrb.mxu1 %v219_v62  ;;  %476 = vmatpush.msrb.mxu3 %v185_v63  ;;  %v107_v61 = vld [vmem:[%s2429_s0 + $0x2e8] sm:$0xff]  ;;  %v200_v62 = vld [vmem:[%s2427_s1 + $0x250] sm:$0xff] }
  0x2e   :  { %348 = vmatpush.msrb.mxu0 %v1301_v22  ;;  %v63_v22 = vld [vmem:[%s2429_s0 + $0x188] sm:$0xff] }
  0x2f   :  { %373 = vmatmul.f32.gmra.mxu1 %v50_v0  ;;  %477 = vmatpush.msrb.mxu3 %v184_v1  ;;  %v199_v63 = vld [vmem:[%s2427_s1 + $0x248] sm:$0xff]  ;;  %v106_v0 = vld [vmem:[%s2429_s0 + $0x2e0] sm:$0xff] }
  0x30   :  { %349 = vmatpush.msrb.mxu0 %v1316_v25  ;;  %605 = vmatpush.msrb.mxu1 %v218_v4  ;;  %v180_v25 = vld [vmem:[%s2427_s1 + $0x1b0] sm:$0xff]  ;;  %v198_v1 = vld [vmem:[%s2427_s1 + $0x240] sm:$0xff] }
  0x31   :  { %299 = vmatmul.f32.gmra.mxu0 %v28_v5  ;;  %311 = vmatmul.f32.gmra.mxu3 %v56_v7  ;;  %v112_v4 = vld [vmem:[%s2429_s0 + $0x310] sm:$0xff]  ;;  %v30_v5 = vld [vmem:[%s2429_s0 + $0x80] sm:$0xff]  ;;  %v197_v7 = vld [vmem:[%s2427_s1 + $0x238] sm:$0xff] }
  0x32   :  { %350 = vmatpush.msrb.mxu0 %v1331_v28  ;;  %606 = vmatpush.msrb.mxu1 %v217_v8  ;;  %v65_v28 = vld [vmem:[%s2429_s0 + $0x198] sm:$0xff]  ;;  %v114_v8 = vld [vmem:[%s2429_s0 + $0x320] sm:$0xff] }
  0x33   :  { %478 = vmatpush.msrb.mxu3 %v183_v10  ;;  %v196_v10 = vld [vmem:[%s2427_s1 + $0x230] sm:$0xff] }
  0x34   :  { %351 = vmatpush.msrb.mxu0 %v1346_v31  ;;  %441 = vmatmul.f32.gmra.mxu2 %v58_v11  ;;  %v64_v31 = vld [vmem:[%s2429_s0 + $0x190] sm:$0xff]  ;;  %v195_v11 = vld [vmem:[%s2427_s1 + $0x228] sm:$0xff] }
  0x35   :  { %607 = vmatpush.msrb.mxu1 %v216_v13  ;;  %479 = vmatpush.msrb.mxu3 %v182_v14  ;;  %v113_v13 = vld [vmem:[%s2429_s0 + $0x318] sm:$0xff]  ;;  %v194_v14 = vld [vmem:[%s2427_s1 + $0x220] sm:$0xff] }
  0x36   :  { %352 = vmatpush.msrb.mxu0 %v1361_v34  ;;  %v70_v34 = vld [vmem:[%s2429_s0 + $0x1c0] sm:$0xff] }
  0x37   :  { %376 = vmatmul.f32.gmra.mxu1 %v57_v16  ;;  %480 = vmatpush.msrb.mxu3 %v181_v17  ;;  %v119_v16 = vld [vmem:[%s2429_s0 + $0x348] sm:$0xff]  ;;  %v37_v17 = vld [vmem:[%s2429_s0 + $0xb8] sm:$0xff] }
  0x38   :  { %353 = vmatpush.msrb.mxu0 %v1376_v37  ;;  %608 = vmatpush.msrb.mxu1 %v215_v19  ;;  %v72_v37 = vld [vmem:[%s2429_s0 + $0x1d0] sm:$0xff]  ;;  %v193_v19 = vld [vmem:[%s2427_s1 + $0x218] sm:$0xff] }
  0x39   :  { %302 = vmatmul.f32.gmra.mxu0 %v35_v20  ;;  %314 = vmatmul.f32.gmra.mxu3 %v63_v22  ;;  %v121_v20 = vld [vmem:[%s2429_s0 + $0x358] sm:$0xff]  ;;  %v192_v22 = vld [vmem:[%s2427_s1 + $0x210] sm:$0xff] }
  0x3a   :  { %354 = vmatpush.msrb.mxu0 %v1391_v40  ;;  %609 = vmatpush.msrb.mxu1 %v214_v23  ;;  %v178_v40 = vld [vmem:[%s2427_s1 + $0x1a0] sm:$0xff]  ;;  %v191_v23 = vld [vmem:[%s2427_s1 + $0x208] sm:$0xff] }
  0x3b   :  { %481 = vmatpush.msrb.mxu3 %v180_v25  ;;  %v120_v25 = vld [vmem:[%s2429_s0 + $0x350] sm:$0xff] }
  0x3c   :  { %355 = vmatpush.msrb.mxu0 %v1406_v43  ;;  %444 = vmatmul.f32.gmra.mxu2 %v65_v28  ;;  %v211_v43 = vld [vmem:[%s2427_s1 + $0x2a8] sm:$0xff]  ;;  %v17_v28 = vld [vmem:[%s2429_s0 + $0x18] sm:$0xff] }
  0x3d   :  { %610 = vmatpush.msrb.mxu1 %v213_v29  ;;  %482 = vmatpush.msrb.mxu3 %v179_v32  ;;  %v18_v29 = vld [vmem:[%s2429_s0 + $0x20] sm:$0xff]  ;;  %v19_v32 = vld [vmem:[%s2429_s0 + $0x28] sm:$0xff] }
  0x3e   :  { %356 = vmatpush.msrb.mxu0 %v1432_v49  ;;  %v175_v49 = vld [vmem:[%s2427_s1 + $0x188] sm:$0xff] }
  0x3f   :  { %379 = vmatmul.f32.gmra.mxu1 %v64_v31  ;;  %483 = vmatpush.msrb.mxu3 %v178_v40  ;;  %v20_v31 = vld [vmem:[%s2429_s0 + $0x30] sm:$0xff]  ;;  %v31_v40 = vld [vmem:[%s2429_s0 + $0x88] sm:$0xff] }
  0x40   :  { %357 = vmatpush.msrb.mxu0 %v1449_v53  ;;  %611 = vmatpush.msrb.mxu1 %v212_v38  ;;  %v205_v53 = vld [vmem:[%s2427_s1 + $0x278] sm:$0xff]  ;;  %v26_v38 = vld [vmem:[%s2429_s0 + $0x60] sm:$0xff] }
  0x41   :  { %317 = vmatmul.f32.gmra.mxu3 %v70_v34  ;;  %358 = vmatmul.f32.vlgmr.msrb.gmra.mxu0 %v15_v35  ;;  %v24_v34 = vld [vmem:[%s2429_s0 + $0x50] sm:$0xff]  ;;  %v25_v35 = vld [vmem:[%s2429_s0 + $0x58] sm:$0xff] }
  0x42   :  { %407 = vmatpush.msra.mxu0 %v1202_v2  ;;  %612 = vmatpush.msrb.mxu1 %v211_v43  ;;  %v77_v2 = vld [vmem:[%s2429_s0 + $0x1f8] sm:$0xff]  ;;  %v34_v43 = vld [vmem:[%s2429_s0 + $0xa0] sm:$0xff] }
  0x44   :  { %408 = vmatpush.msra.mxu0 %v1207_v3  ;;  %447 = vmatmul.f32.gmra.mxu2 %v72_v37  ;;  %v22_v3 = vld [vmem:[%s2429_s0 + $0x40] sm:$0xff]  ;;  %v27_v37 = vld [vmem:[%s2429_s0 + $0x68] sm:$0xff] }
  0x45   :  { %613 = vmatpush.msrb.mxu1 %v210_v45 }
  0x46   :  { %409 = vmatpush.msra.mxu0 %v1221_v6  ;;  %v177_v6 = vld [vmem:[%s2427_s1 + $0x198] sm:$0xff] }
  0x47   :  { %382 = vmatmul.f32.gmra.mxu1 %v71_v41  ;;  %484 = vmatpush.msrb.mxu3 %v177_v6  ;;  %v32_v41 = vld [vmem:[%s2429_s0 + $0x90] sm:$0xff]  ;;  %v41_v6 = vld [vmem:[%s2429_s0 + $0xd8] sm:$0xff] }
  0x48   :  { %410 = vmatpush.msra.mxu0 %v1236_v9  ;;  %v78_v9 = vld [vmem:[%s2429_s0 + $0x200] sm:$0xff] }
  0x49   :  { %320 = vmatmul.f32.gmra.mxu3 %v77_v2  ;;  %361 = vmatmul.f32.gmra.mxu0 %v22_v3  ;;  %v33_v2 = vld [vmem:[%s2429_s0 + $0x98] sm:$0xff]  ;;  %v38_v3 = vld [vmem:[%s2429_s0 + $0xc0] sm:$0xff] }
  0x4a   :  { %411 = vmatpush.msra.mxu0 %v1251_v12  ;;  %485 = vmatpush.msrb.mxu3 %v176_v46  ;;  %v84_v12 = vld [vmem:[%s2429_s0 + $0x230] sm:$0xff]  ;;  %v45_v46 = vld [vmem:[%s2429_s0 + $0xf8] sm:$0xff] }
  0x4c   :  { %412 = vmatpush.msra.mxu0 %v1266_v15  ;;  %450 = vmatmul.f32.gmra.mxu2 %v79_v44  ;;  %v29_v15 = vld [vmem:[%s2429_s0 + $0x78] sm:$0xff]  ;;  %v39_v44 = vld [vmem:[%s2429_s0 + $0xc8] sm:$0xff] }
  0x4d   :  { %486 = vmatpush.msrb.mxu3 %v175_v49  ;;  %v47_v49 = vld [vmem:[%s2429_s0 + $0x108] sm:$0xff] }
  0x4e   :  { %413 = vmatpush.msra.mxu0 %v1281_v18  ;;  %v209_v18 = vld [vmem:[%s2427_s1 + $0x298] sm:$0xff] }
  0x4f   :  { %385 = vmatmul.f32.gmra.mxu1 %v78_v9  ;;  %487 = vmatpush.msrb.mxu3 %v174_v51  ;;  %v40_v9 = vld [vmem:[%s2429_s0 + $0xd0] sm:$0xff] }
  0x50   :  { %414 = vmatpush.msra.mxu0 %v1296_v21  ;;  %614 = vmatpush.msrb.mxu1 %v209_v18  ;;  %v85_v21 = vld [vmem:[%s2429_s0 + $0x238] sm:$0xff] }
  0x51   :  { %323 = vmatmul.f32.gmra.mxu3 %v84_v12  ;;  %364 = vmatmul.f32.gmra.mxu0 %v29_v15  ;;  %v46_v12 = vld [vmem:[%s2429_s0 + $0x100] sm:$0xff] }
  0x52   :  { %415 = vmatpush.msra.mxu0 %v1311_v24  ;;  %v36_v24 = vld [vmem:[%s2429_s0 + $0xb0] sm:$0xff]  ;;  %v1822_v15 = vld [vmem:[%s2428_s2] ss:$0 sm:$0xff] }
  0x54   :  { %416 = vmatpush.msra.mxu0 %v1326_v27  ;;  %453 = vmatmul.f32.gmra.mxu2 %v86_v47  ;;  %v93_v27 = vld [vmem:[%s2429_s0 + $0x278] sm:$0xff]  ;;  %v48_v47 = vld [vmem:[%s2429_s0 + $0x110] sm:$0xff] }
  0x56   :  { %417 = vmatpush.msra.mxu0 %v1341_v30  ;;  %v208_v30 = vld [vmem:[%s2427_s1 + $0x290] sm:$0xff] }
  0x57   :  { %388 = vmatmul.f32.gmra.mxu1 %v85_v21 }
  0x58   :  { %418 = vmatpush.msra.mxu0 %v1356_v33  ;;  %615 = vmatpush.msrb.mxu1 %v208_v30  ;;  %v92_v33 = vld [vmem:[%s2429_s0 + $0x270] sm:$0xff]  ;;  %v53_v30 = vld [vmem:[%s2429_s0 + $0x138] sm:$0xff] }
  0x59   :  { %326 = vmatmul.f32.gmra.mxu3 %v91_v50  ;;  %367 = vmatmul.f32.gmra.mxu0 %v36_v24 }
  0x5a   :  { %419 = vmatpush.msra.mxu0 %v1371_v36  ;;  %616 = vmatpush.msrb.mxu1 %v207_v52  ;;  %v98_v36 = vld [vmem:[%s2429_s0 + $0x2a0] sm:$0xff] }
  0x5c   :  { %420 = vmatpush.msra.mxu0 %v1386_v39  ;;  %456 = vmatmul.f32.gmra.mxu2 %v93_v27  ;;  %v16_v39 = vld [vmem:[%s2429_s0 + $0x10] sm:$0xff] }
  0x5d   :  { %617 = vmatpush.msrb.mxu1 %v206_v55  ;;  %v52_v27 = vld [vmem:[%s2429_s0 + $0x130] sm:$0xff] }
  0x5e   :  { %421 = vmatpush.msra.mxu0 %v1401_v42  ;;  %v100_v42 = vld [vmem:[%s2429_s0 + $0x2b0] sm:$0xff] }
  0x5f   :  { %391 = vmatmul.f32.gmra.mxu1 %v92_v33 }
  0x60   :  { %422 = vmatpush.msra.mxu0 %v1427_v48  ;;  %v99_v48 = vld [vmem:[%s2429_s0 + $0x2a8] sm:$0xff] }
  0x61   :  { %329 = vmatmul.f32.gmra.mxu3 %v98_v36  ;;  %423 = vmatmul.f32.vlgmr.msra.gmra.mxu0 %v16_v39  ;;  %v55_v36 = vld [vmem:[%s2429_s0 + $0x148] sm:$0xff] }
  0x62   :  { %537 = vmatpush.msrb.mxu0 %v205_v53 }
  0x64   :  { %459 = vmatmul.f32.gmra.mxu2 %v100_v42  ;;  %538 = vmatpush.msrb.mxu0 %v204_v54  ;;  %v54_v42 = vld [vmem:[%s2429_s0 + $0x140] sm:$0xff] }
  0x66   :  { %539 = vmatpush.msrb.mxu0 %v203_v56  ;;  %v59_v56 = vld [vmem:[%s2429_s0 + $0x168] sm:$0xff] }
  0x67   :  { %394 = vmatmul.f32.gmra.mxu1 %v99_v48  ;;  %v60_v48 = vld [vmem:[%s2429_s0 + $0x170] sm:$0xff] }
  0x68   :  { %540 = vmatpush.msrb.mxu0 %v202_v57 }
  0x69   :  { %332 = vmatmul.f32.gmra.mxu3 %v105_v58  ;;  %426 = vmatmul.f32.gmra.mxu0 %v23_v59 }
  0x6a   :  { %541 = vmatpush.msrb.mxu0 %v201_v60  ;;  %v62_v60 = vld [vmem:[%s2429_s0 + $0x180] sm:$0xff] }
  0x6c   :  { %462 = vmatmul.f32.gmra.mxu2 %v107_v61  ;;  %542 = vmatpush.msrb.mxu0 %v200_v62 }
  0x6e   :  { %543 = vmatpush.msrb.mxu0 %v199_v63  ;;  %v61_v63 = vld [vmem:[%s2429_s0 + $0x178] sm:$0xff] }
  0x6f   :  { %397 = vmatmul.f32.gmra.mxu1 %v106_v0 }
  0x70   :  { %544 = vmatpush.msrb.mxu0 %v198_v1 }
  0x71   :  { %335 = vmatmul.f32.gmra.mxu3 %v112_v4  ;;  %429 = vmatmul.f32.gmra.mxu0 %v30_v5  ;;  %v66_v4 = vld [vmem:[%s2429_s0 + $0x1a0] sm:$0xff]  ;;  %v67_v5 = vld [vmem:[%s2429_s0 + $0x1a8] sm:$0xff] }
  0x72   :  { %545 = vmatpush.msrb.mxu0 %v197_v7 }
  0x74   :  { %465 = vmatmul.f32.gmra.mxu2 %v114_v8  ;;  %546 = vmatpush.msrb.mxu0 %v196_v10 }
  0x76   :  { %547 = vmatpush.msrb.mxu0 %v195_v11  ;;  %v69_v11 = vld [vmem:[%s2429_s0 + $0x1b8] sm:$0xff] }
  0x77   :  { %400 = vmatmul.f32.gmra.mxu1 %v113_v13 }
  0x78   :  { %548 = vmatpush.msrb.mxu0 %v194_v14 }
  0x79   :  { %338 = vmatmul.f32.gmra.mxu3 %v119_v16  ;;  %432 = vmatmul.f32.gmra.mxu0 %v37_v17  ;;  %v68_v16 = vld [vmem:[%s2429_s0 + $0x1b0] sm:$0xff] }
  0x7a   :  { %549 = vmatpush.msrb.mxu0 %v193_v19 }
  0x7c   :  { %468 = vmatmul.f32.gmra.mxu2 %v121_v20  ;;  %550 = vmatpush.msrb.mxu0 %v192_v22  ;;  %v73_v20 = vld [vmem:[%s2429_s0 + $0x1d8] sm:$0xff]  ;;  %v74_v22 = vld [vmem:[%s2429_s0 + $0x1e0] sm:$0xff] }
  0x7e   :  { %551 = vmatpush.msrb.mxu0 %v191_v23 }
  0x7f   :  { %403 = vmatmul.f32.gmra.mxu1 %v120_v25 }
  0x80   :  { %552 = vmatpush.msrb.mxu0 %v190_v26 }
  0x81   :  { %488 = vmatmul.f32.vlgmr.msrb.gmra.mxu3 %v17_v28  ;;  %553 = vmatmul.f32.vlgmr.msrb.gmra.mxu0 %v18_v29  ;;  %v76_v28 = vld [vmem:[%s2429_s0 + $0x1f0] sm:$0xff] }
  0x84   :  { %1108 = vmatmul.msk.f32.vlgmr.msrb.gmra.mxu2 %vm228_vm0, %v20_v31 }
  0x87   :  { %618 = vmatmul.f32.vlgmr.msrb.gmra.mxu1 %v19_v32  ;;  %v75_v32 = vld [vmem:[%s2429_s0 + $0x1e8] sm:$0xff] }
  0x89   :  { %491 = vmatmul.f32.gmra.mxu3 %v24_v34  ;;  %556 = vmatmul.f32.gmra.mxu0 %v25_v35 }
  0x8c   :  { %1109 = vmatmul.msk.f32.gmra.mxu2 %vm228_vm0, %v27_v37  ;;  %v80_v37 = vld [vmem:[%s2429_s0 + $0x210] sm:$0xff] }
  0x8f   :  { %621 = vmatmul.f32.gmra.mxu1 %v26_v38  ;;  %v81_v38 = vld [vmem:[%s2429_s0 + $0x218] sm:$0xff] }
  0x91   :  { %494 = vmatmul.f32.gmra.mxu3 %v31_v40  ;;  %559 = vmatmul.f32.gmra.mxu0 %v32_v41 }
  0x94   :  { %1110 = vmatmul.msk.f32.gmra.mxu2 %vm228_vm0, %v34_v43 }
  0x97   :  { %624 = vmatmul.f32.gmra.mxu1 %v33_v2  ;;  %v83_v2 = vld [vmem:[%s2429_s0 + $0x228] sm:$0xff] }
  0x99   :  { %497 = vmatmul.f32.gmra.mxu3 %v38_v3  ;;  %562 = vmatmul.f32.gmra.mxu0 %v39_v44 }
  0x9c   :  { %1111 = vmatmul.msk.f32.gmra.mxu2 %vm228_vm0, %v41_v6  ;;  %v82_v6 = vld [vmem:[%s2429_s0 + $0x220] sm:$0xff] }
  0x9e   :  { %v1811_v45 = vpop.f32.mrf.mxu0 }
  0x9f   :  { %627 = vmatmul.f32.gmra.mxu1 %v40_v9 }
  0xa1   :  { %500 = vmatmul.f32.gmra.mxu3 %v45_v46  ;;  %565 = vmatmul.f32.gmra.mxu0 %v46_v12  ;;  %v87_v12 = vld [vmem:[%s2429_s0 + $0x248] sm:$0xff] }
  0xa4   :  { %v306_v18 = vpop.f32.mrf.mxu3  ;;  %v371_v21 = vpop.f32.mrf.mxu1  ;;  %1112 = vmatmul.msk.f32.gmra.mxu2 %vm228_vm0, %v48_v47  ;;  %v88_v47 = vld [vmem:[%s2429_s0 + $0x250] sm:$0xff] }
  0xa5   :  { %v307_v50 = vadd.f32 %v1822_v15, %v306_v18 }
  0xa6   :  { %v1832_v24 = vpop.f32.mrf.mxu0 }
  0xa7   :  { %v372_v51 = vadd.f32 %v371_v21, %v307_v50  ;;  %v436_v33 = vpop.f32.mrf.mxu2  ;;  %630 = vmatmul.f32.gmra.mxu1 %v47_v49  ;;  %v90_v50 = vld [vmem:[%s2429_s0 + $0x260] sm:$0xff] }
  0xa9   :  { %v1840_v52 = vadd.f32 %v436_v33, %v372_v51  ;;  %503 = vmatmul.f32.gmra.mxu3 %v52_v27  ;;  %568 = vmatmul.f32.gmra.mxu0 %v53_v30  ;;  %v89_v51 = vld [vmem:[%s2429_s0 + $0x258] sm:$0xff] }
  0xac   :  { %v309_v39 = vpop.f32.mrf.mxu3  ;;  %v374_v53 = vpop.f32.mrf.mxu1  ;;  %1113 = vmatmul.msk.f32.gmra.mxu2 %vm228_vm0, %v55_v36 }
  0xad   :  { %v310_v54 = vadd.f32 %v1822_v15, %v309_v39  ;;  %v94_v39 = vld [vmem:[%s2429_s0 + $0x280] sm:$0xff] }
  0xae   :  { %v1850_v55 = vpop.f32.mrf.mxu0 }
  0xaf   :  { %v375_v57 = vadd.f32 %v374_v53, %v310_v54  ;;  %v439_v58 = vpop.f32.mrf.mxu2  ;;  %633 = vmatmul.f32.gmra.mxu1 %v54_v42  ;;  %v95_v53 = vld [vmem:[%s2429_s0 + $0x288] sm:$0xff] }
  0xb1   :  { %v1858_v59 = vadd.f32 %v439_v58, %v375_v57  ;;  %506 = vmatmul.f32.gmra.mxu3 %v59_v56  ;;  %571 = vmatmul.f32.gmra.mxu0 %v60_v48  ;;  %v97_v48 = vld [vmem:[%s2429_s0 + $0x298] sm:$0xff] }
  0xb4   :  { %v312_v61 = vpop.f32.mrf.mxu3  ;;  %v377_v62 = vpop.f32.mrf.mxu1  ;;  %1114 = vmatmul.msk.f32.gmra.mxu2 %vm228_vm0, %v62_v60  ;;  %v96_v60 = vld [vmem:[%s2429_s0 + $0x290] sm:$0xff] }
  0xb5   :  { %v313_v0 = vadd.f32 %v1822_v15, %v312_v61 }
  0xb6   :  { %v1868_v1 = vpop.f32.mrf.mxu0 }
  0xb7   :  { %v378_v7 = vadd.f32 %v377_v62, %v313_v0  ;;  %v442_v8 = vpop.f32.mrf.mxu2  ;;  %636 = vmatmul.f32.gmra.mxu1 %v61_v63  ;;  %v101_v63 = vld [vmem:[%s2429_s0 + $0x2b8] sm:$0xff]  ;;  %v102_v0 = vld [vmem:[%s2429_s0 + $0x2c0] sm:$0xff] }
  0xb9   :  { %v1876_v10 = vadd.f32 %v442_v8, %v378_v7  ;;  %509 = vmatmul.f32.gmra.mxu3 %v66_v4  ;;  %574 = vmatmul.f32.gmra.mxu0 %v67_v5  ;;  %v104_v8 = vld [vmem:[%s2429_s0 + $0x2d0] sm:$0xff] }
  0xbc   :  { %v315_v13 = vpop.f32.mrf.mxu3  ;;  %v380_v14 = vpop.f32.mrf.mxu1  ;;  %1115 = vmatmul.msk.f32.gmra.mxu2 %vm228_vm0, %v69_v11 }
  0xbd   :  { %v316_v17 = vadd.f32 %v1822_v15, %v315_v13 }
  0xbe   :  { %v1886_v19 = vpop.f32.mrf.mxu0 }
  0xbf   :  { %v381_v23 = vadd.f32 %v380_v14, %v316_v17  ;;  %v445_v25 = vpop.f32.mrf.mxu2  ;;  %639 = vmatmul.f32.gmra.mxu1 %v68_v16  ;;  %v103_v14 = vld [vmem:[%s2429_s0 + $0x2c8] sm:$0xff] }
  0xc1   :  { %v1894_v26 = vadd.f32 %v445_v25, %v381_v23  ;;  %512 = vmatmul.f32.gmra.mxu3 %v73_v20  ;;  %577 = vmatmul.f32.gmra.mxu0 %v74_v22  ;;  %v108_v20 = vld [vmem:[%s2429_s0 + $0x2f0] sm:$0xff]  ;;  %v109_v22 = vld [vmem:[%s2429_s0 + $0x2f8] sm:$0xff] }
  0xc4   :  { %v318_v29 = vpop.f32.mrf.mxu3  ;;  %v383_v31 = vpop.f32.mrf.mxu1  ;;  %1116 = vmatmul.msk.f32.gmra.mxu2 %vm228_vm0, %v76_v28 }
  0xc5   :  { %v319_v34 = vadd.f32 %v1822_v15, %v318_v29  ;;  %v111_v29 = vld [vmem:[%s2429_s0 + $0x308] sm:$0xff] }
  0xc6   :  { %v1904_v35 = vpop.f32.mrf.mxu0 }
  0xc7   :  { %v384_v40 = vadd.f32 %v383_v31, %v319_v34  ;;  %v448_v41 = vpop.f32.mrf.mxu2  ;;  %642 = vmatmul.f32.gmra.mxu1 %v75_v32  ;;  %v110_v34 = vld [vmem:[%s2429_s0 + $0x300] sm:$0xff] }
  0xc9   :  { %v1912_v43 = vadd.f32 %v448_v41, %v384_v40  ;;  %515 = vmatmul.f32.gmra.mxu3 %v80_v37  ;;  %580 = vmatmul.f32.gmra.mxu0 %v81_v38  ;;  %v115_v40 = vld [vmem:[%s2429_s0 + $0x328] sm:$0xff]  ;;  %v116_v41 = vld [vmem:[%s2429_s0 + $0x330] sm:$0xff] }
  0xcc   :  { %v321_v3 = vpop.f32.mrf.mxu3  ;;  %v386_v44 = vpop.f32.mrf.mxu1  ;;  %1117 = vmatmul.msk.f32.gmra.mxu2 %vm228_vm0, %v83_v2 }
  0xcd   :  { %v322_v9 = vadd.f32 %v1822_v15, %v321_v3 }
  0xce   :  { %v1922_v46 = vpop.f32.mrf.mxu0 }
  0xcf   :  { %v387_v18 = vadd.f32 %v386_v44, %v322_v9  ;;  %v451_v21 = vpop.f32.mrf.mxu2  ;;  %645 = vmatmul.f32.gmra.mxu1 %v82_v6  ;;  %v118_v6 = vld [vmem:[%s2429_s0 + $0x340] sm:$0xff] }
  0xd1   :  { %v1930_v49 = vadd.f32 %v451_v21, %v387_v18  ;;  %518 = vmatmul.f32.gmra.mxu3 %v87_v12  ;;  %583 = vmatmul.f32.gmra.mxu0 %v88_v47  ;;  %v117_v47 = vld [vmem:[%s2429_s0 + $0x338] sm:$0xff] }
  0xd4   :  { %v324_v27 = vpop.f32.mrf.mxu3  ;;  %v389_v30 = vpop.f32.mrf.mxu1  ;;  %1118 = vmatmul.msk.f32.gmra.mxu2 %vm228_vm0, %v90_v50  ;;  %v122_v50 = vld [vmem:[%s2429_s0 + $0x360] sm:$0xff] }
  0xd5   :  { %v325_v33 = vadd.f32 %v1822_v15, %v324_v27  ;;  %v123_v27 = vld [vmem:[%s2429_s0 + $0x368] sm:$0xff] }
  0xd6   :  { %v1940_v36 = vpop.f32.mrf.mxu0 }
  0xd7   :  { %v390_v42 = vadd.f32 %v389_v30, %v325_v33  ;;  %v454_v54 = vpop.f32.mrf.mxu2  ;;  %648 = vmatmul.f32.gmra.mxu1 %v89_v51 }
  0xd9   :  { %v1948_v56 = vadd.f32 %v454_v54, %v390_v42  ;;  %521 = vmatmul.f32.gmra.mxu3 %v94_v39  ;;  %586 = vmatmul.f32.gmra.mxu0 %v95_v53  ;;  %v125_v39 = vld [vmem:[%s2429_s0 + $0x378] sm:$0xff]  ;;  %v124_v54 = vld [vmem:[%s2429_s0 + $0x370] sm:$0xff] }
  0xdc   :  { %v327_v57 = vpop.f32.mrf.mxu3  ;;  %v392_v58 = vpop.f32.mrf.mxu1  ;;  %1119 = vmatmul.msk.f32.gmra.mxu2 %vm228_vm0, %v97_v48 }
  0xdd   :  { %v328_v61 = vadd.f32 %v1822_v15, %v327_v57 }
  0xde   :  { %v1958_v62 = vpop.f32.mrf.mxu0 }
  0xdf   :  { %v393_v4 = vadd.f32 %v392_v58, %v328_v61  ;;  %v457_v5 = vpop.f32.mrf.mxu2  ;;  %651 = vmatmul.f32.gmra.mxu1 %v96_v60  ;;  %v295_v58 = vadd.f32 %v1822_v15, %v1811_v45 }
  0xe1   :  { %v1966_v7 = vadd.f32 %v457_v5, %v393_v4  ;;  %524 = vmatmul.f32.gmra.mxu3 %v101_v63  ;;  %589 = vmatmul.f32.gmra.mxu0 %v102_v0  ;;  %v360_v63 = vadd.f32 %v1886_v19, %v295_v58 }
  0xe3   :  { %v425_v4 = vadd.f32 %v1958_v62, %v360_v63 }
  0xe4   :  { %v330_v11 = vpop.f32.mrf.mxu3  ;;  %v395_v13 = vpop.f32.mrf.mxu1  ;;  %1120 = vmatmul.msk.f32.gmra.mxu2 %vm228_vm0, %v104_v8 }
  0xe5   :  { %v331_v16 = vadd.f32 %v1822_v15, %v330_v11 }
  0xe6   :  { %v427_v17 = vpop.f32.mrf.mxu0 }
  0xe7   :  { %v396_v23 = vadd.f32 %v395_v13, %v331_v16  ;;  %v460_v25 = vpop.f32.mrf.mxu2  ;;  %654 = vmatmul.f32.gmra.mxu1 %v103_v14  ;;  %v298_v14 = vadd.f32 %v1822_v15, %v1832_v24 }
  0xe9   :  { %v1982_v28 = vadd.f32 %v460_v25, %v396_v23  ;;  %527 = vmatmul.f32.gmra.mxu3 %v108_v20  ;;  %592 = vmatmul.f32.gmra.mxu0 %v109_v22  ;;  %v363_v45 = vadd.f32 %v1904_v35, %v298_v14 }
  0xeb   :  { %v428_v23 = vadd.f32 %v427_v17, %v363_v45 }
  0xec   :  { %v333_v31 = vpop.f32.mrf.mxu3  ;;  %v398_v32 = vpop.f32.mrf.mxu1  ;;  %1121 = vmatmul.msk.f32.gmra.mxu2 %vm228_vm0, %v111_v29 }
  0xed   :  { %v334_v37 = vadd.f32 %v1822_v15, %v333_v31 }
  0xee   :  { %v1992_v38 = vpop.f32.mrf.mxu0 }
  0xef   :  { %v399_v2 = vadd.f32 %v398_v32, %v334_v37  ;;  %v463_v3 = vpop.f32.mrf.mxu2  ;;  %657 = vmatmul.f32.gmra.mxu1 %v110_v34  ;;  %v301_v34 = vadd.f32 %v1822_v15, %v1850_v55  ;;  %v304_v55 = vadd.f32 %v1822_v15, %v1868_v1 }
  0xf1   :  { %v2000_v44 = vadd.f32 %v463_v3, %v399_v2  ;;  %530 = vmatmul.f32.gmra.mxu3 %v115_v40  ;;  %595 = vmatmul.f32.gmra.mxu0 %v116_v41  ;;  %v366_v41 = vadd.f32 %v1922_v46, %v301_v34 }
  0xf3   :  { %v431_v17 = vadd.f32 %v1992_v38, %v366_v41 }
  0xf4   :  { %v336_v9 = vpop.f32.mrf.mxu3  ;;  %v401_v12 = vpop.f32.mrf.mxu1  ;;  %1122 = vmatmul.msk.f32.gmra.mxu2 %vm228_vm0, %v118_v6 }
  0xf5   :  { %v337_v18 = vadd.f32 %v1822_v15, %v336_v9 }
  0xf6   :  { %v2010_v21 = vpop.f32.mrf.mxu0 }
  0xf7   :  { %v402_v30 = vadd.f32 %v401_v12, %v337_v18  ;;  %v466_v51 = vpop.f32.mrf.mxu2  ;;  %660 = vmatmul.f32.gmra.mxu1 %v117_v47 }
  0xf9   :  { %v2018_v33 = vadd.f32 %v466_v51, %v402_v30  ;;  %533 = vmatmul.f32.gmra.mxu3 %v122_v50  ;;  %598 = vmatmul.f32.gmra.mxu0 %v123_v27  ;;  %v369_v30 = vadd.f32 %v1940_v36, %v304_v55 }
  0xfb   :  { %v434_v38 = vadd.f32 %v2010_v21, %v369_v30 }
  0xfc   :  { %v339_v53 = vpop.f32.mrf.mxu3  ;;  %v404_v42 = vpop.f32.mrf.mxu1  ;;  %1123 = vmatmul.msk.f32.gmra.mxu2 %vm228_vm0, %v125_v39 }
  0xfd   :  { %v340_v48 = vadd.f32 %v1822_v15, %v339_v53 }
  0xfe   :  { %v554_v57 = vpop.f32.mrf.mxu0 }
  0xff   :  { %v405_v60 = vadd.f32 %v404_v42, %v340_v48  ;;  %v469_v61 = vpop.f32.mrf.mxu2  ;;  %663 = vmatmul.f32.gmra.mxu1 %v124_v54 }
 0x101   :  { %v2031_v0 = vadd.f32 %v469_v61, %v405_v60 }
 0x104   :  { %v489_v5 = vpop.f32.mrf.mxu3  ;;  %v619_v8 = vpop.f32.mrf.mxu1 }
 0x105   :  { %v490_v11 = vadd.f32 %v489_v5, %v425_v4 }
 0x106   :  { %v557_v13 = vpop.f32.mrf.mxu0 }
 0x107   :  { %v555_v16 = vadd.f32 %v554_v57, %v490_v11  ;;  %v684_v20 = vpop.f32.mrf.mxu2 }
 0x109   :  { %v620_v22 = vadd.f32 %v619_v8, %v555_v16 }
 0x10b   :  { %v685_v25 = vadd.f32 %v684_v20, %v620_v22 }
 0x10c   :  { %v492_v29 = vpop.f32.mrf.mxu3  ;;  %v622_v19 = vpop.f32.mrf.mxu1 }
 0x10d   :  { %v732_v31 = vmax.f32 %v685_v25, -10.0  ;;  %v493_v32 = vadd.f32 %v492_v29, %v428_v23 }
 0x10e   :  { %v560_v62 = vpop.f32.mrf.mxu0 }
 0x10f   :  { %v2039_v37 = vmin.f32 %v732_v31, 10.5  ;;  %v558_v40 = vadd.f32 %v557_v13, %v493_v32  ;;  %v687_v24 = vpop.f32.mrf.mxu2 }
 0x111   :  { %v623_v2 = vadd.f32 %v622_v19, %v558_v40  ;;  %v767_v35 = vsel %vm766_vm1, %v2039_v37, -inf }
 0x112   :  { %768 = vmax.xlane.f32.xlu0 %v767_v35 }
 0x113   :  { %v688_v3 = vadd.f32 %v687_v24, %v623_v2 }
 0x114   :  { %v495_v6 = vpop.f32.mrf.mxu3  ;;  %v625_v9 = vpop.f32.mrf.mxu1 }
 0x115   :  { %v733_v12 = vmax.f32 %v688_v3, -10.0  ;;  %v496_v47 = vadd.f32 %v495_v6, %v431_v17 }
 0x116   :  { %v563_v18 = vpop.f32.mrf.mxu0 }
 0x117   :  { %v2047_v50 = vmin.f32 %v733_v12, 10.5  ;;  %v561_v27 = vadd.f32 %v560_v62, %v496_v47  ;;  %v690_v46 = vpop.f32.mrf.mxu2 }
 0x119   :  { %v626_v51 = vadd.f32 %v625_v9, %v561_v27  ;;  %v770_v39 = vsel %vm766_vm1, %v2047_v50, -inf }
 0x11a   :  { %771 = vmax.xlane.f32.xlu0 %v770_v39 }
 0x11b   :  { %v691_v53 = vadd.f32 %v690_v46, %v626_v51 }
 0x11c   :  { %v498_v42 = vpop.f32.mrf.mxu3  ;;  %v628_v54 = vpop.f32.mrf.mxu1 }
 0x11d   :  { %v734_v48 = vmax.f32 %v691_v53, -10.0  ;;  %v499_v57 = vadd.f32 %v498_v42, %v434_v38 }
 0x11e   :  { %v566_v58 = vpop.f32.mrf.mxu0 }
 0x11f   :  { %v2053_v15 = vmin.f32 %v734_v48, 10.5  ;;  %v564_v1 = vadd.f32 %v563_v18, %v499_v57  ;;  %v693_v60 = vpop.f32.mrf.mxu2 }
 0x121   :  { %v629_v61 = vadd.f32 %v628_v54, %v564_v1  ;;  %v773_v36 = vsel %vm766_vm1, %v2053_v15, -inf }
 0x122   :  { %774 = vmax.xlane.f32.xlu1 %v773_v36 }
 0x123   :  { %v694_v63 = vadd.f32 %v693_v60, %v629_v61 }
 0x124   :  { %v501_v4 = vpop.f32.mrf.mxu3  ;;  %v631_v5 = vpop.f32.mrf.mxu1 }
 0x125   :  { %v735_v8 = vmax.f32 %v694_v63, -10.0  ;;  %v502_v21 = vadd.f32 %v501_v4, %v1840_v52 }
 0x126   :  { %v569_v11 = vpop.f32.mrf.mxu0 }
 0x127   :  { %v2058_v13 = vmin.f32 %v735_v8, 10.5  ;;  %v567_v14 = vadd.f32 %v566_v58, %v502_v21  ;;  %v696_v16 = vpop.f32.mrf.mxu2 }
 0x129   :  { %v632_v20 = vadd.f32 %v631_v5, %v567_v14  ;;  %v776_v45 = vsel %vm766_vm1, %v2058_v13, -inf }
 0x12a   :  { %777 = vmax.xlane.f32.xlu1 %v776_v45 }
 0x12b   :  { %v697_v22 = vadd.f32 %v696_v16, %v632_v20 }
 0x12c   :  { %v504_v23 = vpop.f32.mrf.mxu3  ;;  %v634_v25 = vpop.f32.mrf.mxu1 }
 0x12d   :  { %v736_v29 = vmax.f32 %v697_v22, -10.0  ;;  %v505_v19 = vadd.f32 %v504_v23, %v1858_v59 }
 0x12e   :  { %v572_v31 = vpop.f32.mrf.mxu0 }
 0x12f   :  { %v2063_v32 = vmin.f32 %v736_v29, 10.5  ;;  %v570_v52 = vadd.f32 %v569_v11, %v505_v19  ;;  %v699_v62 = vpop.f32.mrf.mxu2 }
 0x131   :  { %v635_v34 = vadd.f32 %v634_v25, %v570_v52  ;;  %v779_v40 = vsel %vm766_vm1, %v2063_v32, -inf }
 0x132   :  { %780 = vmax.xlane.f32.xlu2 %v779_v40 }
 0x133   :  { %v700_v24 = vadd.f32 %v699_v62, %v635_v34 }
 0x134   :  { %v507_v41 = vpop.f32.mrf.mxu3  ;;  %v637_v2 = vpop.f32.mrf.mxu1 }
 0x135   :  { %v737_v35 = vmax.f32 %v700_v24, -10.0  ;;  %v508_v17 = vadd.f32 %v507_v41, %v1876_v10 }
 0x136   :  { %v575_v3 = vpop.f32.mrf.mxu0 }
 0x137   :  { %v2068_v6 = vmin.f32 %v737_v35, 10.5  ;;  %v573_v59 = vadd.f32 %v572_v31, %v508_v17  ;;  %v702_v9 = vpop.f32.mrf.mxu2 }
 0x139   :  { %v638_v12 = vadd.f32 %v637_v2, %v573_v59  ;;  %v782_v47 = vsel %vm766_vm1, %v2068_v6, -inf }
 0x13a   :  { %783 = vmax.xlane.f32.xlu2 %v782_v47 }
 0x13b   :  { %v703_v18 = vadd.f32 %v702_v9, %v638_v12 }
 0x13c   :  { %v510_v55 = vpop.f32.mrf.mxu3  ;;  %v640_v27 = vpop.f32.mrf.mxu1 }
 0x13d   :  { %v738_v46 = vmax.f32 %v703_v18, -10.0  ;;  %v511_v30 = vadd.f32 %v510_v55, %v1894_v26 }
 0x13e   :  { %v578_v51 = vpop.f32.mrf.mxu0 }
 0x13f   :  { %v2073_v39 = vmin.f32 %v738_v46, 10.5  ;;  %v576_v10 = vadd.f32 %v575_v3, %v511_v30  ;;  %v705_v38 = vpop.f32.mrf.mxu2 }
 0x141   :  { %v641_v53 = vadd.f32 %v640_v27, %v576_v10  ;;  %v785_v42 = vsel %vm766_vm1, %v2073_v39, -inf }
 0x142   :  { %786 = vmax.xlane.f32.xlu0 %v785_v42 }
 0x143   :  { %v706_v54 = vadd.f32 %v705_v38, %v641_v53 }
 0x144   :  { %v513_v48 = vpop.f32.mrf.mxu3  ;;  %v643_v57 = vpop.f32.mrf.mxu1 }
 0x145   :  { %v739_v58 = vmax.f32 %v706_v54, -10.0  ;;  %v514_v1 = vadd.f32 %v513_v48, %v1912_v43 }
 0x146   :  { %v581_v60 = vpop.f32.mrf.mxu0 }
 0x147   :  { %v2078_v61 = vmin.f32 %v739_v58, 10.5  ;;  %v579_v26 = vadd.f32 %v578_v51, %v514_v1  ;;  %v708_v36 = vpop.f32.mrf.mxu2 }
 0x149   :  { %v644_v63 = vadd.f32 %v643_v57, %v579_v26  ;;  %v788_v4 = vsel %vm766_vm1, %v2078_v61, -inf }
 0x14a   :  { %789 = vmax.xlane.f32.xlu1 %v788_v4 }
 0x14b   :  { %v709_v5 = vadd.f32 %v708_v36, %v644_v63 }
 0x14c   :  { %v516_v8 = vpop.f32.mrf.mxu3  ;;  %v646_v21 = vpop.f32.mrf.mxu1 }
 0x14d   :  { %v740_v11 = vmax.f32 %v709_v5, -10.0  ;;  %v517_v14 = vadd.f32 %v516_v8, %v1930_v49 }
 0x14e   :  { %v584_v16 = vpop.f32.mrf.mxu0 }
 0x14f   :  { %v2083_v20 = vmin.f32 %v740_v11, 10.5  ;;  %v582_v43 = vadd.f32 %v581_v60, %v517_v14  ;;  %v711_v45 = vpop.f32.mrf.mxu2 }
 0x151   :  { %v647_v22 = vadd.f32 %v646_v21, %v582_v43  ;;  %v791_v23 = vsel %vm766_vm1, %v2083_v20, -inf }
 0x152   :  { %792 = vmax.xlane.f32.xlu2 %v791_v23 }
 0x153   :  { %v712_v25 = vadd.f32 %v711_v45, %v647_v22 }
 0x154   :  { %v519_v29 = vpop.f32.mrf.mxu3  ;;  %v649_v19 = vpop.f32.mrf.mxu1 }
 0x155   :  { %v741_v31 = vmax.f32 %v712_v25, -10.0  ;;  %v520_v52 = vadd.f32 %v519_v29, %v1948_v56 }
 0x156   :  { %v587_v62 = vpop.f32.mrf.mxu0 }
 0x157   :  { %v2088_v34 = vmin.f32 %v741_v31, 10.5  ;;  %v585_v49 = vadd.f32 %v584_v16, %v520_v52  ;;  %v714_v40 = vpop.f32.mrf.mxu2 }
 0x159   :  { %v650_v24 = vadd.f32 %v649_v19, %v585_v49  ;;  %v794_v41 = vsel %vm766_vm1, %v2088_v34, -inf }
 0x15a   :  { %795 = vmax.xlane.f32.xlu0 %v794_v41 }
 0x15b   :  { %v715_v2 = vadd.f32 %v714_v40, %v650_v24 }
 0x15c   :  { %v522_v35 = vpop.f32.mrf.mxu3  ;;  %v652_v17 = vpop.f32.mrf.mxu1 }
 0x15d   :  { %v742_v3 = vmax.f32 %v715_v2, -10.0  ;;  %v523_v59 = vadd.f32 %v522_v35, %v1966_v7 }
 0x15e   :  { %v590_v9 = vpop.f32.mrf.mxu0 }
 0x15f   :  { %v2093_v12 = vmin.f32 %v742_v3, 10.5  ;;  %v588_v56 = vadd.f32 %v587_v62, %v523_v59  ;;  %v717_v47 = vpop.f32.mrf.mxu2 }
 0x161   :  { %v653_v18 = vadd.f32 %v652_v17, %v588_v56  ;;  %v797_v55 = vsel %vm766_vm1, %v2093_v12, -inf }
 0x162   :  { %798 = vmax.xlane.f32.xlu1 %v797_v55 }
 0x163   :  { %v718_v27 = vadd.f32 %v717_v47, %v653_v18 }
 0x164   :  { %v525_v46 = vpop.f32.mrf.mxu3  ;;  %v655_v30 = vpop.f32.mrf.mxu1 }
 0x165   :  { %v743_v51 = vmax.f32 %v718_v27, -10.0  ;;  %v526_v10 = vadd.f32 %v525_v46, %v1982_v28 }
 0x166   :  { %v593_v42 = vpop.f32.mrf.mxu0 }
 0x167   :  { %v2098_v38 = vmin.f32 %v743_v51, 10.5  ;;  %v591_v53 = vadd.f32 %v590_v9, %v526_v10  ;;  %v720_v7 = vpop.f32.mrf.mxu2 }
 0x169   :  { %v656_v54 = vadd.f32 %v655_v30, %v591_v53  ;;  %v800_v48 = vsel %vm766_vm1, %v2098_v38, -inf }
 0x16a   :  { %801 = vmax.xlane.f32.xlu2 %v800_v48 }
 0x16b   :  { %v721_v57 = vadd.f32 %v720_v7, %v656_v54 }
 0x16c   :  { %v528_v58 = vpop.f32.mrf.mxu3  ;;  %v658_v1 = vpop.f32.mrf.mxu1 }
 0x16d   :  { %v744_v60 = vmax.f32 %v721_v57, -10.0  ;;  %v529_v26 = vadd.f32 %v528_v58, %v2000_v44 }
 0x16e   :  { %v596_v8 = vpop.f32.mrf.mxu0 }
 0x16f   :  { %v2103_v36 = vmin.f32 %v744_v60, 10.5  ;;  %v594_v63 = vadd.f32 %v593_v42, %v529_v26  ;;  %v723_v28 = vpop.f32.mrf.mxu2 }
 0x171   :  { %v659_v4 = vadd.f32 %v658_v1, %v594_v63  ;;  %v803_v5 = vsel %vm766_vm1, %v2103_v36, -inf }
 0x172   :  { %804 = vmax.xlane.f32.xlu0 %v803_v5 }
 0x173   :  { %v724_v21 = vadd.f32 %v723_v28, %v659_v4 }
 0x174   :  { %v531_v11 = vpop.f32.mrf.mxu3  ;;  %v661_v14 = vpop.f32.mrf.mxu1 }
 0x175   :  { %v745_v16 = vmax.f32 %v724_v21, -10.0  ;;  %v532_v43 = vadd.f32 %v531_v11, %v2018_v33  ;;  %v764_v33 = vlaneseq }
 0x176   :  { %v599_v31 = vpop.f32.mrf.mxu0 }
 0x177   :  { %v2108_v45 = vmin.f32 %v745_v16, 10.5  ;;  %v597_v22 = vadd.f32 %v596_v8, %v532_v43  ;;  %v726_v44 = vpop.f32.mrf.mxu2  ;;  %v2117_v3 = vand.u32 127, %v764_v33 }
 0x179   :  { %v662_v23 = vadd.f32 %v661_v14, %v597_v22  ;;  %v806_v25 = vsel %vm766_vm1, %v2108_v45, -inf }
 0x17a   :  { %807 = vmax.xlane.f32.xlu1 %v806_v25 }
 0x17b   :  { %v727_v29 = vadd.f32 %v726_v44, %v662_v23 }
 0x17c   :  { %v534_v19 = vpop.f32.mrf.mxu3  ;;  %v664_v49 = vpop.f32.mrf.mxu1 }
 0x17d   :  { %v746_v52 = vmax.f32 %v727_v29, -10.0  ;;  %v535_v62 = vadd.f32 %v534_v19, %v2031_v0 }
 0x17f   :  { %v2113_v40 = vmin.f32 %v746_v52, 10.5  ;;  %v600_v24 = vadd.f32 %v599_v31, %v535_v62  ;;  %v729_v41 = vpop.f32.mrf.mxu2 }
 0x181   :  { %v665_v2 = vadd.f32 %v664_v49, %v600_v24  ;;  %v809_v35 = vsel %vm766_vm1, %v2113_v40, -inf }
 0x182   :  { %810 = vmax.xlane.f32.xlu2 %v809_v35 }
 0x183   :  { %v730_v17 = vadd.f32 %v729_v41, %v665_v2 }
 0x185   :  { %v747_v59 = vmax.f32 %v730_v17, -10.0  ;;  %v769_v9 = vpop.xlane.xlu0 %768 }
 0x186   :  { %vm815_vm2 = vcmp.eq.f32.partialorder %v2039_v37, %v769_v9 }
 0x187   :  { %v2120_v56 = vmin.f32 %v747_v59, 10.5  ;;  %v831_v0 = vsel %vm815_vm2, %v2117_v3, 10 }
 0x188   :  { %v2124_v47 = vsel %vm766_vm1, %v831_v0, 2147483647 }
 0x189   :  { %v812_v18 = vsel %vm766_vm1, %v2120_v56, -inf  ;;  %v849_v55 = vshra.s32 %v2124_v47, 16 }
 0x18a   :  { %813 = vmax.xlane.f32.xlu0 %v812_v18 }
 0x18b   :  { %v2129_v27 = vcvt.s32.f32 %v849_v55 }
 0x18d   :  { %852 = vmin.xlane.f32.xlu1 %v2129_v27  ;;  %v772_v46 = vpop.xlane.xlu0 %771 }
 0x18e   :  { %vm816_vm3 = vcmp.eq.f32.partialorder %v2047_v50, %v772_v46 }
 0x18f   :  { %v832_v37 = vsel %vm816_vm3, %v2117_v3, 10 }
 0x190   :  { %v2135_v30 = vsel %vm766_vm1, %v832_v37, 2147483647 }
 0x191   :  { %v864_v51 = vshra.s32 %v2135_v30, 16 }
 0x193   :  { %v2138_v10 = vcvt.s32.f32 %v864_v51 }
 0x195   :  { %v775_v53 = vpop.xlane.xlu1 %774  ;;  %867 = vmin.xlane.f32.xlu0 %v2138_v10 }
 0x196   :  { %vm817_vm4 = vcmp.eq.f32.partialorder %v2053_v15, %v775_v53 }
 0x197   :  { %v833_v7 = vsel %vm817_vm4, %v2117_v3, 10 }
 0x198   :  { %v2144_v42 = vsel %vm766_vm1, %v833_v7, 2147483647 }
 0x199   :  { %v879_v50 = vshra.s32 %v2144_v42, 16 }
 0x19b   :  { %v2147_v54 = vcvt.s32.f32 %v879_v50 }
 0x19d   :  { %882 = vmin.xlane.f32.xlu2 %v2147_v54  ;;  %v778_v48 = vpop.xlane.xlu1 %777 }
 0x19e   :  { %vm818_vm5 = vcmp.eq.f32.partialorder %v2058_v13, %v778_v48 }
 0x19f   :  { %v834_v57 = vsel %vm818_vm5, %v2117_v3, 10 }
 0x1a0   :  { %v2153_v58 = vsel %vm766_vm1, %v834_v57, 2147483647 }
 0x1a1   :  { %v894_v15 = vshra.s32 %v2153_v58, 16 }
 0x1a3   :  { %v2156_v1 = vcvt.s32.f32 %v894_v15 }
 0x1a5   :  { %v781_v60 = vpop.xlane.xlu2 %780  ;;  %897 = vmin.xlane.f32.xlu0 %v2156_v1 }
 0x1a6   :  { %vm819_vm6 = vcmp.eq.f32.partialorder %v2063_v32, %v781_v60 }
 0x1a7   :  { %v835_v26 = vsel %vm819_vm6, %v2117_v3, 10 }
 0x1a8   :  { %v2162_v63 = vsel %vm766_vm1, %v835_v26, 2147483647 }
 0x1a9   :  { %v909_v13 = vshra.s32 %v2162_v63, 16 }
 0x1ab   :  { %v2165_v28 = vcvt.s32.f32 %v909_v13 }
 0x1ad   :  { %v784_v4 = vpop.xlane.xlu2 %783  ;;  %912 = vmin.xlane.f32.xlu1 %v2165_v28 }
 0x1ae   :  { %vm820_vm7 = vcmp.eq.f32.partialorder %v2068_v6, %v784_v4  ;;  %v848_v4 = vand.u32 65535, %v2124_v47 }
 0x1af   :  { %v836_v5 = vsel %vm820_vm7, %v2117_v3, 10 }
 0x1b0   :  { %v2171_v8 = vsel %vm766_vm1, %v836_v5, 2147483647 }
 0x1b1   :  { %v924_v32 = vshra.s32 %v2171_v8, 16 }
 0x1b3   :  { %v2174_v21 = vcvt.s32.f32 %v924_v32 }
 0x1b5   :  { %927 = vmin.xlane.f32.xlu2 %v2174_v21  ;;  %v787_v11 = vpop.xlane.xlu0 %786 }
 0x1b6   :  { %vm821_vm8 = vcmp.eq.f32.partialorder %v2073_v39, %v787_v11 }
 0x1b7   :  { %v837_v14 = vsel %vm821_vm8, %v2117_v3, 10 }
 0x1b8   :  { %v2180_v16 = vsel %vm766_vm1, %v837_v14, 2147483647  ;;  %v850_v14 = vcvt.s32.f32 %v848_v4 }
 0x1b9   :  { %v939_v6 = vshra.s32 %v2180_v16, 16 }
 0x1bb   :  { %v2183_v43 = vcvt.s32.f32 %v939_v6 }
 0x1bd   :  { %v790_v22 = vpop.xlane.xlu1 %789  ;;  %942 = vmin.xlane.f32.xlu0 %v2183_v43 }
 0x1be   :  { %vm822_vm9 = vcmp.eq.f32.partialorder %v2078_v61, %v790_v22 }
 0x1bf   :  { %v838_v44 = vsel %vm822_vm9, %v2117_v3, 10 }
 0x1c0   :  { %v2189_v23 = vsel %vm766_vm1, %v838_v44, 2147483647 }
 0x1c1   :  { %v954_v39 = vshra.s32 %v2189_v23, 16 }
 0x1c3   :  { %v2192_v25 = vcvt.s32.f32 %v954_v39 }
 0x1c5   :  { %v793_v29 = vpop.xlane.xlu2 %792  ;;  %957 = vmin.xlane.f32.xlu1 %v2192_v25 }
 0x1c6   :  { %vm823_vm10 = vcmp.eq.f32.partialorder %v2083_v20, %v793_v29 }
 0x1c7   :  { %v839_v19 = vsel %vm823_vm10, %v2117_v3, 10 }
 0x1c8   :  { %v2198_v31 = vsel %vm766_vm1, %v839_v19, 2147483647  ;;  %v893_v19 = vand.u32 65535, %v2153_v58  ;;  %v923_v58 = vand.u32 65535, %v2171_v8  ;;  %v953_v8 = vand.u32 65535, %v2189_v23 }
 0x1c9   :  { %v969_v61 = vshra.s32 %v2198_v31, 16 }
 0x1cb   :  { %v2201_v52 = vcvt.s32.f32 %v969_v61 }
 0x1cd   :  { %972 = vmin.xlane.f32.xlu2 %v2201_v52  ;;  %v796_v62 = vpop.xlane.xlu0 %795 }
 0x1ce   :  { %vm824_vm11 = vcmp.eq.f32.partialorder %v2088_v34, %v796_v62  ;;  %v895_v62 = vcvt.s32.f32 %v893_v19 }
 0x1cf   :  { %v840_v49 = vsel %vm824_vm11, %v2117_v3, 10 }
 0x1d0   :  { %v2207_v24 = vsel %vm766_vm1, %v840_v49, 2147483647 }
 0x1d1   :  { %v984_v20 = vshra.s32 %v2207_v24, 16  ;;  %v983_v23 = vand.u32 65535, %v2207_v24 }
 0x1d3   :  { %v2210_v33 = vcvt.s32.f32 %v984_v20 }
 0x1d5   :  { %v799_v41 = vpop.xlane.xlu1 %798  ;;  %987 = vmin.xlane.f32.xlu0 %v2210_v33 }
 0x1d6   :  { %vm825_vm12 = vcmp.eq.f32.partialorder %v2093_v12, %v799_v41 }
 0x1d7   :  { %v841_v2 = vsel %vm825_vm12, %v2117_v3, 10 }
 0x1d8   :  { %v2216_v35 = vsel %vm766_vm1, %v841_v2, 2147483647  ;;  %v925_v2 = vcvt.s32.f32 %v923_v58 }
 0x1d9   :  { %v999_v34 = vshra.s32 %v2216_v35, 16 }
 0x1db   :  { %v2219_v17 = vcvt.s32.f32 %v999_v34 }
 0x1dd   :  { %v802_v59 = vpop.xlane.xlu2 %801  ;;  %1002 = vmin.xlane.f32.xlu1 %v2219_v17 }
 0x1de   :  { %vm826_vm13 = vcmp.eq.f32.partialorder %v2098_v38, %v802_v59 }
 0x1df   :  { %v842_v9 = vsel %vm826_vm13, %v2117_v3, 10 }
 0x1e0   :  { %v2225_v0 = vsel %vm766_vm1, %v842_v9, 2147483647 }
 0x1e1   :  { %v1014_v12 = vshra.s32 %v2225_v0, 16  ;;  %v1013_v24 = vand.u32 65535, %v2225_v0 }
 0x1e3   :  { %v2228_v18 = vcvt.s32.f32 %v1014_v12  ;;  %v955_v12 = vcvt.s32.f32 %v953_v8 }
 0x1e5   :  { %1017 = vmin.xlane.f32.xlu2 %v2228_v18  ;;  %v805_v55 = vpop.xlane.xlu0 %804 }
 0x1e6   :  { %vm827_vm14 = vcmp.eq.f32.partialorder %v2103_v36, %v805_v55 }
 0x1e7   :  { %v843_v46 = vsel %vm827_vm14, %v2117_v3, 10 }
 0x1e8   :  { %v2234_v37 = vsel %vm766_vm1, %v843_v46, 2147483647 }
 0x1e9   :  { %v1029_v38 = vshra.s32 %v2234_v37, 16 }
 0x1eb   :  { %v2237_v51 = vcvt.s32.f32 %v1029_v38 }
 0x1ed   :  { %v808_v53 = vpop.xlane.xlu1 %807  ;;  %1032 = vmin.xlane.f32.xlu0 %v2237_v51 }
 0x1ee   :  { %vm828_vm15 = vcmp.eq.f32.partialorder %v2108_v45, %v808_v53  ;;  %v985_v53 = vcvt.s32.f32 %v983_v23 }
 0x1ef   :  { %v844_v7 = vsel %vm828_vm15, %v2117_v3, 10 }
 0x1f0   :  { %v2243_v50 = vsel %vm766_vm1, %v844_v7, 2147483647 }
 0x1f1   :  { %v1044_v36 = vshra.s32 %v2243_v50, 16  ;;  %v1043_v0 = vand.u32 65535, %v2243_v50 }
 0x1f3   :  { %v2246_v48 = vcvt.s32.f32 %v1044_v36 }
 0x1f5   :  { %v811_v57 = vpop.xlane.xlu2 %810  ;;  %1047 = vmin.xlane.f32.xlu1 %v2246_v48 }
 0x1f6   :  { %vm829_vm0 = vcmp.eq.f32.partialorder %v2113_v40, %v811_v57 }
 0x1f7   :  { %v845_v15 = vsel %vm829_vm0, %v2117_v3, 10 }
 0x1f8   :  { %v2252_v60 = vsel %vm766_vm1, %v845_v15, 2147483647  ;;  %v1015_v15 = vcvt.s32.f32 %v1013_v24 }
 0x1f9   :  { %v1059_v45 = vshra.s32 %v2252_v60, 16 }
 0x1fb   :  { %v2255_v26 = vcvt.s32.f32 %v1059_v45 }
 0x1fd   :  { %1062 = vmin.xlane.f32.xlu2 %v2255_v26  ;;  %v814_v13 = vpop.xlane.xlu0 %813 }
 0x1fe   :  { %vm830_vm2 = vcmp.eq.f32.partialorder %v2120_v56, %v814_v13  ;;  %v863_v56 = vand.u32 65535, %v2135_v30 }
 0x1ff   :  { %v846_v5 = vsel %vm830_vm2, %v2117_v3, 10 }
 0x200   :  { %v2262_v40 = vsel %vm766_vm1, %v846_v5, 2147483647  ;;  %v2264_v32 = vpop.xlane.xlu1 %852  ;;  %v865_v47 = vcvt.s32.f32 %v863_v56  ;;  %v1045_v5 = vcvt.s32.f32 %v1043_v0 }
 0x201   :  { %vm854_vm3 = vcmp.eq.f32.partialorder %v2129_v27, %v2264_v32  ;;  %v1074_v11 = vshra.s32 %v2262_v40, 16  ;;  %v878_v27 = vand.u32 65535, %v2144_v42  ;;  %v908_v42 = vand.u32 65535, %v2162_v63 }
 0x202   :  { %v855_v22 = vsel %vm854_vm3, %v850_v14, inf  ;;  %v938_v63 = vand.u32 65535, %v2180_v16  ;;  %v968_v16 = vand.u32 65535, %v2198_v31  ;;  %v998_v31 = vand.u32 65535, %v2216_v35 }
 0x203   :  { %v2269_v6 = vcvt.s32.f32 %v1074_v11  ;;  %v880_v29 = vcvt.s32.f32 %v878_v27  ;;  %v910_v20 = vcvt.s32.f32 %v908_v42  ;;  %v1028_v35 = vand.u32 65535, %v2234_v37 }
 0x204   :  { %v940_v59 = vcvt.s32.f32 %v938_v63  ;;  %v970_v46 = vcvt.s32.f32 %v968_v16  ;;  %v1000_v36 = vcvt.s32.f32 %v998_v31  ;;  %v1058_v37 = vand.u32 65535, %v2252_v60 }
 0x205   :  { %856 = vmin.xlane.f32.xlu2 %v855_v22  ;;  %1077 = vmin.xlane.f32.xlu0 %v2269_v6  ;;  %v1030_v13 = vcvt.s32.f32 %v1028_v35  ;;  %v1073_v50 = vand.u32 65535, %v2262_v40  ;;  %v859_v22 = vcvt.f32.s32 %v2264_v32  ;;  %vm1087_vm3 = vcmask 7168  }
 0x206   :  { %v1060_v14 = vcvt.s32.f32 %v1058_v37 }
 0x208   :  { %v2273_v3 = vpop.xlane.xlu0 %867 }
 0x209   :  { %vm869_vm1 = vcmp.eq.f32.partialorder %v2138_v10, %v2273_v3 }
 0x20a   :  { %v870_v44 = vsel %vm869_vm1, %v865_v47, inf }
 0x20b   :  { %871 = vmin.xlane.f32.xlu1 %v870_v44  ;;  %v860_v44 = vshll.u32 %v859_v22, 16 }
 0x210   :  { %v2278_v39 = vpop.xlane.xlu2 %882 }
 0x211   :  { %vm884_vm4 = vcmp.eq.f32.partialorder %v2147_v54, %v2278_v39 }
 0x212   :  { %v885_v30 = vsel %vm884_vm4, %v880_v29, inf  ;;  %v874_v29 = vcvt.f32.s32 %v2273_v3 }
 0x213   :  { %886 = vmin.xlane.f32.xlu1 %v885_v30 }
 0x214   :  { %v875_v32 = vshll.u32 %v874_v29, 16 }
 0x218   :  { %v2283_v61 = vpop.xlane.xlu0 %897 }
 0x219   :  { %vm899_vm5 = vcmp.eq.f32.partialorder %v2156_v1, %v2283_v61 }
 0x21a   :  { %v900_v10 = vsel %vm899_vm5, %v895_v62, inf  ;;  %v889_v62 = vcvt.f32.s32 %v2278_v39 }
 0x21b   :  { %901 = vmin.xlane.f32.xlu2 %v900_v10 }
 0x21c   :  { %v890_v3 = vshll.u32 %v889_v62, 16 }
 0x220   :  { %v2288_v49 = vpop.xlane.xlu1 %912 }
 0x221   :  { %vm914_vm6 = vcmp.eq.f32.partialorder %v2165_v28, %v2288_v49 }
 0x222   :  { %v915_v54 = vsel %vm914_vm6, %v910_v20, inf  ;;  %v904_v20 = vcvt.f32.s32 %v2283_v61 }
 0x223   :  { %916 = vmin.xlane.f32.xlu0 %v915_v54 }
 0x224   :  { %v905_v58 = vshll.u32 %v904_v20, 16 }
 0x228   :  { %v2293_v41 = vpop.xlane.xlu2 %927 }
 0x229   :  { %vm929_vm7 = vcmp.eq.f32.partialorder %v2174_v21, %v2293_v41  ;;  %v934_v8 = vcvt.f32.s32 %v2293_v41 }
 0x22a   :  { %v930_v1 = vsel %vm929_vm7, %v925_v2, inf }
 0x22b   :  { %931 = vmin.xlane.f32.xlu1 %v930_v1  ;;  %v919_v1 = vcvt.f32.s32 %v2288_v49 }
 0x230   :  { %v2298_v34 = vpop.xlane.xlu0 %942 }
 0x231   :  { %vm944_vm8 = vcmp.eq.f32.partialorder %v2183_v43, %v2298_v34 }
 0x232   :  { %v945_v28 = vsel %vm944_vm8, %v940_v59, inf  ;;  %v920_v59 = vshll.u32 %v919_v1, 16 }
 0x233   :  { %946 = vmin.xlane.f32.xlu2 %v945_v28 }
 0x238   :  { %v2303_v9 = vpop.xlane.xlu1 %957 }
 0x239   :  { %vm959_vm9 = vcmp.eq.f32.partialorder %v2192_v25, %v2303_v9 }
 0x23a   :  { %v960_v21 = vsel %vm959_vm9, %v955_v12, inf }
 0x23b   :  { %961 = vmin.xlane.f32.xlu0 %v960_v21  ;;  %v935_v21 = vshll.u32 %v934_v8, 16 }
 0x240   :  { %v2308_v55 = vpop.xlane.xlu2 %972 }
 0x241   :  { %vm974_vm10 = vcmp.eq.f32.partialorder %v2201_v52, %v2308_v55  ;;  %v979_v24 = vcvt.f32.s32 %v2308_v55 }
 0x242   :  { %v975_v43 = vsel %vm974_vm10, %v970_v46, inf  ;;  %v949_v46 = vcvt.f32.s32 %v2298_v34 }
 0x243   :  { %976 = vmin.xlane.f32.xlu1 %v975_v43 }
 0x244   :  { %v950_v23 = vshll.u32 %v949_v46, 16 }
 0x248   :  { %v2313_v38 = vpop.xlane.xlu0 %987 }
 0x249   :  { %vm989_vm11 = vcmp.eq.f32.partialorder %v2210_v33, %v2313_v38 }
 0x24a   :  { %v990_v25 = vsel %vm989_vm11, %v985_v53, inf }
 0x24b   :  { %991 = vmin.xlane.f32.xlu2 %v990_v25  ;;  %v964_v25 = vcvt.f32.s32 %v2303_v9 }
 0x250   :  { %v2318_v7 = vpop.xlane.xlu1 %1002 }
 0x251   :  { %vm1004_vm12 = vcmp.eq.f32.partialorder %v2219_v17, %v2318_v7 }
 0x252   :  { %v1005_v52 = vsel %vm1004_vm12, %v1000_v36, inf  ;;  %v965_v36 = vshll.u32 %v964_v25, 16 }
 0x253   :  { %1006 = vmin.xlane.f32.xlu0 %v1005_v52 }
 0x258   :  { %v2323_v57 = vpop.xlane.xlu2 %1017 }
 0x259   :  { %vm1019_vm13 = vcmp.eq.f32.partialorder %v2228_v18, %v2323_v57 }
 0x25a   :  { %v1020_v33 = vsel %vm1019_vm13, %v1015_v15, inf }
 0x25b   :  { %1021 = vmin.xlane.f32.xlu1 %v1020_v33  ;;  %v980_v33 = vshll.u32 %v979_v24, 16 }
 0x260   :  { %v2328_v45 = vpop.xlane.xlu0 %1032 }
 0x261   :  { %vm1034_vm14 = vcmp.eq.f32.partialorder %v2237_v51, %v2328_v45 }
 0x262   :  { %v1035_v17 = vsel %vm1034_vm14, %v1030_v13, inf  ;;  %v994_v13 = vcvt.f32.s32 %v2313_v38 }
 0x263   :  { %1036 = vmin.xlane.f32.xlu2 %v1035_v17 }
 0x264   :  { %v995_v0 = vshll.u32 %v994_v13, 16 }
 0x268   :  { %v2333_v4 = vpop.xlane.xlu1 %1047 }
 0x269   :  { %vm1049_vm15 = vcmp.eq.f32.partialorder %v2246_v48, %v2333_v4  ;;  %v1075_v48 = vcvt.s32.f32 %v1073_v50  ;;  %v1024_v50 = vcvt.f32.s32 %v2323_v57 }
 0x26a   :  { %v1050_v18 = vsel %vm1049_vm15, %v1045_v5, inf }
 0x26b   :  { %1051 = vmin.xlane.f32.xlu0 %v1050_v18  ;;  %v1009_v18 = vcvt.f32.s32 %v2318_v7 }
 0x270   :  { %v2338_v11 = vpop.xlane.xlu2 %1062 }
 0x271   :  { %vm1064_vm0 = vcmp.eq.f32.partialorder %v2255_v26, %v2338_v11 }
 0x272   :  { %v1065_v51 = vsel %vm1064_vm0, %v1060_v14, inf  ;;  %v1010_v14 = vshll.u32 %v1009_v18, 16 }
 0x273   :  { %1066 = vmin.xlane.f32.xlu1 %v1065_v51 }
 0x278   :  { %v857_v56 = vpop.xlane.xlu2 %856  ;;  %v2344_v47 = vpop.xlane.xlu0 %1077 }
 0x279   :  { %v858_v27 = vcvt.f32.s32 %v857_v56  ;;  %vm1079_vm2 = vcmp.eq.f32.partialorder %v2269_v6, %v2344_v47  ;;  %v1025_v56 = vshll.u32 %v1024_v50, 16 }
 0x27a   :  { %v1080_v60 = vsel %vm1079_vm2, %v1075_v48, inf }
 0x27b   :  { %v861_v26 = vadd.s32 %v860_v44, %v858_v27  ;;  %1081 = vmin.xlane.f32.xlu2 %v1080_v60  ;;  %v1039_v44 = vcvt.f32.s32 %v2328_v45 }
 0x27d   :  { %1088 = vst.msk [vmem:[%s2430_s3] sm:$0xff] %vm1087_vm3, %v861_v26  ;;  %v1040_v60 = vshll.u32 %v1039_v44, 16  ;;  %v1054_v26 = vcvt.f32.s32 %v2333_v4 }
 0x27e   :  { %v872_v40 = vpop.xlane.xlu1 %871 }
 0x27f   :  { %v873_v30 = vcvt.f32.s32 %v872_v40 }
 0x281   :  { %v876_v19 = vadd.s32 %v875_v32, %v873_v30  ;;  %v1055_v32 = vshll.u32 %v1054_v26, 16 }
 0x283   :  { %1089 = vst.msk [vmem:[%s2430_s3 + $0x8] sm:$0xff] %vm1087_vm3, %v876_v19  ;;  %v1069_v19 = vcvt.f32.s32 %v2338_v11 }
 0x286   :  { %v887_v6 = vpop.xlane.xlu1 %886 }
 0x287   :  { %v888_v10 = vcvt.f32.s32 %v887_v6  ;;  %v1070_v6 = vshll.u32 %v1069_v19, 16 }
 0x289   :  { %v891_v42 = vadd.s32 %v890_v3, %v888_v10  ;;  %v1084_v10 = vcvt.f32.s32 %v2344_v47 }
 0x28b   :  { %1090 = vst.msk [vmem:[%s2430_s3 + $0x10] sm:$0xff] %vm1087_vm3, %v891_v42  ;;  %v1085_v20 = vshll.u32 %v1084_v10, 16 }
 0x28e   :  { %v902_v54 = vpop.xlane.xlu2 %901 }
 0x28f   :  { %v903_v2 = vcvt.f32.s32 %v902_v54 }
 0x291   :  { %v906_v39 = vadd.s32 %v905_v58, %v903_v2 }
 0x293   :  { %1091 = vst.msk [vmem:[%s2430_s3 + $0x18] sm:$0xff] %vm1087_vm3, %v906_v39 }
 0x296   :  { %v917_v63 = vpop.xlane.xlu0 %916 }
 0x297   :  { %v918_v28 = vcvt.f32.s32 %v917_v63 }
 0x299   :  { %v921_v61 = vadd.s32 %v920_v59, %v918_v28 }
 0x29b   :  { %1092 = vst.msk [vmem:[%s2430_s3 + $0x20] sm:$0xff] %vm1087_vm3, %v921_v61 }
 0x29e   :  { %v932_v12 = vpop.xlane.xlu1 %931 }
 0x29f   :  { %v933_v16 = vcvt.f32.s32 %v932_v12 }
 0x2a1   :  { %v936_v49 = vadd.s32 %v935_v21, %v933_v16 }
 0x2a3   :  { %1093 = vst.msk [vmem:[%s2430_s3 + $0x28] sm:$0xff] %vm1087_vm3, %v936_v49 }
 0x2a6   :  { %v947_v43 = vpop.xlane.xlu2 %946 }
 0x2a7   :  { %v948_v53 = vcvt.f32.s32 %v947_v43 }
 0x2a9   :  { %v951_v41 = vadd.s32 %v950_v23, %v948_v53 }
 0x2ab   :  { %1094 = vst.msk [vmem:[%s2430_s3 + $0x30] sm:$0xff] %vm1087_vm3, %v951_v41 }
 0x2ae   :  { %v962_v31 = vpop.xlane.xlu0 %961 }
 0x2af   :  { %v963_v52 = vcvt.f32.s32 %v962_v31 }
 0x2b1   :  { %v966_v34 = vadd.s32 %v965_v36, %v963_v52 }
 0x2b3   :  { %1095 = vst.msk [vmem:[%s2430_s3 + $0x38] sm:$0xff] %vm1087_vm3, %v966_v34 }
 0x2b6   :  { %v977_v15 = vpop.xlane.xlu1 %976 }
 0x2b7   :  { %v978_v35 = vcvt.f32.s32 %v977_v15 }
 0x2b9   :  { %v981_v9 = vadd.s32 %v980_v33, %v978_v35 }
 0x2bb   :  { %1096 = vst.msk [vmem:[%s2430_s3 + $0x40] sm:$0xff] %vm1087_vm3, %v981_v9 }
 0x2be   :  { %v992_v17 = vpop.xlane.xlu2 %991 }
 0x2bf   :  { %v993_v5 = vcvt.f32.s32 %v992_v17 }
 0x2c1   :  { %v996_v55 = vadd.s32 %v995_v0, %v993_v5 }
 0x2c3   :  { %1097 = vst.msk [vmem:[%s2430_s3 + $0x48] sm:$0xff] %vm1087_vm3, %v996_v55 }
 0x2c6   :  { %v1007_v37 = vpop.xlane.xlu0 %1006 }
 0x2c7   :  { %v1008_v51 = vcvt.f32.s32 %v1007_v37 }
 0x2c9   :  { %v1011_v38 = vadd.s32 %v1010_v14, %v1008_v51 }
 0x2cb   :  { %1098 = vst.msk [vmem:[%s2430_s3 + $0x50] sm:$0xff] %vm1087_vm3, %v1011_v38 }
 0x2ce   :  { %v1022_v22 = vpop.xlane.xlu1 %1021 }
 0x2cf   :  { %v1023_v48 = vcvt.f32.s32 %v1022_v22 }
 0x2d1   :  { %v1026_v7 = vadd.s32 %v1025_v56, %v1023_v48 }
 0x2d3   :  { %1099 = vst.msk [vmem:[%s2430_s3 + $0x58] sm:$0xff] %vm1087_vm3, %v1026_v7 }
 0x2d6   :  { %v1037_v27 = vpop.xlane.xlu2 %1036 }
 0x2d7   :  { %v1038_v29 = vcvt.f32.s32 %v1037_v27 }
 0x2d9   :  { %v1041_v57 = vadd.s32 %v1040_v60, %v1038_v29 }
 0x2db   :  { %1100 = vst.msk [vmem:[%s2430_s3 + $0x60] sm:$0xff] %vm1087_vm3, %v1041_v57 }
 0x2de   :  { %v1052_v40 = vpop.xlane.xlu0 %1051 }
 0x2df   :  { %v1053_v30 = vcvt.f32.s32 %v1052_v40 }
 0x2e1   :  { %v1056_v45 = vadd.s32 %v1055_v32, %v1053_v30 }
 0x2e3   :  { %1101 = vst.msk [vmem:[%s2430_s3 + $0x68] sm:$0xff] %vm1087_vm3, %v1056_v45 }
 0x2e6   :  { %v1067_v62 = vpop.xlane.xlu1 %1066 }
 0x2e7   :  { %v1068_v3 = vcvt.f32.s32 %v1067_v62 }
 0x2e9   :  { %v1071_v4 = vadd.s32 %v1070_v6, %v1068_v3 }
 0x2eb   :  { %1102 = vst.msk [vmem:[%s2430_s3 + $0x70] sm:$0xff] %vm1087_vm3, %v1071_v4 }
 0x2ee   :  { %v1082_v42 = vpop.xlane.xlu2 %1081 }
 0x2ef   :  { %v1083_v54 = vcvt.f32.s32 %v1082_v42 }
 0x2f1   :  { %v1086_v11 = vadd.s32 %v1085_v20, %v1083_v54 }
 0x2f3   :  { %1103 = vst.msk [vmem:[%s2430_s3 + $0x78] sm:$0xff] %vm1087_vm3, %v1086_v11 }

</bundles_post_ra>
